<compile_context>
chip_gen: v7x
topology: tpu7x:2x2x1
jax: 0.10.0
libtpu: 0.0.40
codegen_flags: <defaults>
</compile_context>

<pallas_src>
import functools

import jax
import jax.numpy as jnp
from jax.experimental import pallas as pl
from jax.experimental.pallas import tpu as pltpu


def _head_kernel(feat_ref, w1_ref, scale_ref, shift_ref, out_ref):
    """Fused: spatial mean pool + Linear(2048->512) + BN(eval, bias folded) + LeakyReLU(0.1).

    Grid axis 0 ('parallel') tiles the 512 output columns; the full channel
    contraction happens in a single bf16 MXU matmul per grid point.
    """
    # feat_ref: (B, S, C) f32 -> adaptive avg pool over the spatial axis S (sublane reduce)
    pooled = jnp.mean(feat_ref[...], axis=1)                               # (B, C) f32
    # Linear (bf16 operands, f32 accumulation on the MXU)
    y = jnp.dot(pooled.astype(w1_ref.dtype), w1_ref[...],
                preferred_element_type=jnp.float32)                        # (B, Lb) f32
    # BatchNorm1d (eval) with the Linear bias pre-folded into shift
    y = y * scale_ref[...] + shift_ref[...]
    # LeakyReLU(0.1); Dropout(p=0.5) is identity in eval mode.
    out_ref[...] = jnp.where(y >= 0.0, y, 0.1 * y).astype(out_ref.dtype)


@functools.partial(jax.jit, static_argnames=("n_l_blocks",))
def ftnet_hr_head(feat_nchw, w1, b1, bn_scale, bn_shift, *, n_l_blocks=2):
    """feat_nchw: (B, C, Hf, Wf) float32 backbone features. Returns f: (B, 512) float32."""
    B, C, Hf, Wf = feat_nchw.shape
    L = w1.shape[1]
    S = Hf * Wf
    assert L % n_l_blocks == 0 and (L // n_l_blocks) % 128 == 0, (L, n_l_blocks)
    Lb = L // n_l_blocks

    # glue: NCHW -> (B, S, C), channels last (lane axis, dense 2048 lanes)
    feat = jnp.transpose(feat_nchw, (0, 2, 3, 1)).reshape(B, S, C)
    w1_bf16 = w1.astype(jnp.bfloat16)
    scale_2d = bn_scale.reshape(1, L)
    # fold Linear bias into BN shift:  (acc + b1)*scale + shift == acc*scale + (b1*scale + shift)
    shift_2d = (b1 * bn_scale + bn_shift).reshape(1, L)

    cost = pl.CostEstimate(
        flops=2 * B * C * L,
        transcendentals=0,
        bytes_accessed=(B * S * C * 4          # feature map (f32)
                        + C * L * 2            # weights (bf16)
                        + 2 * L * 4            # scale + shift
                        + B * L * 4),          # output
    )

    return pl.pallas_call(
        _head_kernel,
        out_shape=jax.ShapeDtypeStruct((B, L), jnp.float32),
        grid_spec=pltpu.PrefetchScalarGridSpec(
            num_scalar_prefetch=0,
            grid=(n_l_blocks,),
            in_specs=[
                pl.BlockSpec((B, S, C), lambda j: (0, 0, 0)),   # full feature block (not re-fetched)
                pl.BlockSpec((C, Lb), lambda j: (0, j)),        # weight column slab
                pl.BlockSpec((1, Lb), lambda j: (0, j)),        # BN scale
                pl.BlockSpec((1, Lb), lambda j: (0, j)),        # BN shift (+ folded bias)
            ],
            out_specs=pl.BlockSpec((B, Lb), lambda j: (0, j)),
        ),
        compiler_params=pltpu.CompilerParams(
            dimension_semantics=("parallel",)),
        cost_estimate=cost,
    )(feat, w1_bf16, scale_2d, shift_2d)


def init_params(key, input_dim=2048, linear=512, class_num=77):
    """Deterministic re-creation of ClassBlock(2048, 77, 0.5, linear=512) params."""
    k1, k2, k3, k4 = jax.random.split(key, 4)
    # nn.Linear(2048, 512) + weights_init_kaiming: kaiming_normal a=0, mode='fan_out'
    #   std = sqrt(2 / fan_out) = sqrt(2 / 512); bias = 0
    w1 = jax.random.normal(k1, (input_dim, linear), jnp.float32) * jnp.sqrt(2.0 / linear)
    b1 = jnp.zeros((linear,), jnp.float32)
    # BatchNorm1d(512) + weights_init_kaiming: gamma ~ N(1, 0.02), beta = 0
    gamma = 1.0 + 0.02 * jax.random.normal(k2, (linear,), jnp.float32)
    beta = jnp.zeros((linear,), jnp.float32)
    running_mean = jnp.zeros((linear,), jnp.float32)
    running_var = jnp.ones((linear,), jnp.float32)
    eps = 1e-5
    bn_scale = gamma / jnp.sqrt(running_var + eps)
    bn_shift = beta - running_mean * bn_scale
    # classifier Linear(512, 77): std=0.001, bias=0 — initialized but UNUSED (return_f=True)
    w_cls = 0.001 * jax.random.normal(k3, (linear, class_num), jnp.float32)
    b_cls = jnp.zeros((class_num,), jnp.float32)
    del k4
    return dict(w1=w1, b1=b1, bn_scale=bn_scale, bn_shift=bn_shift,
                w_cls=w_cls, b_cls=b_cls)


def _reference_head(feat_nchw, p):
    """Plain-JAX f32 reference for correctness checking."""
    pooled = jnp.mean(feat_nchw, axis=(2, 3))                  # (B, C)
    y = pooled @ p["w1"] + p["b1"]
    y = y * p["bn_scale"] + p["bn_shift"]
    return jnp.where(y >= 0.0, y, 0.1 * y)


if __name__ == "__main__":
    key = jax.random.PRNGKey(0)
    k_feat, k_params = jax.random.split(key)

    # Backbone output feature map: B=2, C=2048 (required by ClassBlock(2048, ...)),
    # small spatial grid Hf=4, Wf=2  (e.g. a 128x64 image / 32).
    B, C, Hf, Wf = 2, 2048, 4, 2
    feat = jax.random.normal(k_feat, (B, C, Hf, Wf), jnp.float32)

    params = init_params(k_params)

    out = ftnet_hr_head(feat, params["w1"], params["b1"],
                        params["bn_scale"], params["bn_shift"])
    out = jax.block_until_ready(out)

    ref = _reference_head(feat, params)
    assert out.shape == (B, 512), out.shape
    # bf16 weights/activations inside the kernel -> looser tolerance vs the f32 reference
    assert jnp.allclose(out, ref, atol=3e-2, rtol=3e-2), float(jnp.max(jnp.abs(out - ref)))

    print("KERNEL_OK")
</pallas_src>

<mosaic_0001>
module attributes {stable_mosaic.version = 11 : i64} {
  func.func @_head_kernel(%arg0: i32, %arg1: memref<2x8x2048xf32, #tpu.memory_space<vmem>>, %arg2: memref<2048x256xbf16, #tpu.memory_space<vmem>>, %arg3: memref<1x256xf32, #tpu.memory_space<vmem>>, %arg4: memref<1x256xf32, #tpu.memory_space<vmem>>, %arg5: memref<2x256xf32, #tpu.memory_space<vmem>>) attributes {dimension_semantics = [#tpu.dimension_semantics<parallel>], iteration_bounds = array<i64: 2>, scalar_prefetch = 0 : i64, scratch_operands = 0 : i64, tpu.core_type = #tpu.core_type<tc>, window_params = [{pipeline_mode = #tpu.pipeline_mode<synchronous>, transform_indices = @transform_0, window_bounds = array<i64: 2, 8, 2048>}, {transform_indices = @transform_1, window_bounds = array<i64: 2048, 256>}, {transform_indices = @transform_2, window_bounds = array<i64: 1, 256>}, {transform_indices = @transform_3, window_bounds = array<i64: 1, 256>}, {transform_indices = @transform_4, window_bounds = array<i64: 2, 256>}]} {
    %c0 = arith.constant 0 : index
    %c0_0 = arith.constant 0 : index
    %c0_1 = arith.constant 0 : index
    %0 = vector.load %arg1[%c0, %c0_0, %c0_1] : memref<2x8x2048xf32, #tpu.memory_space<vmem>>, vector<2x8x2048xf32>
    %cst = arith.constant dense<0.000000e+00> : vector<2x2048xf32>
    %1 = vector.multi_reduction <add>, %0, %cst [1] : vector<2x8x2048xf32> to vector<2x2048xf32>
    %cst_2 = arith.constant 8.000000e+00 : f32
    %2 = vector.broadcast %cst_2 : f32 to vector<2x2048xf32>
    %3 = arith.divf %1, %2 : vector<2x2048xf32>
    %4 = arith.truncf %3 : vector<2x2048xf32> to vector<2x2048xbf16>
    %c0_3 = arith.constant 0 : index
    %c0_4 = arith.constant 0 : index
    %5 = vector.load %arg2[%c0_3, %c0_4] : memref<2048x256xbf16, #tpu.memory_space<vmem>>, vector<2048x256xbf16>
    %cst_5 = arith.constant dense<0.000000e+00> : vector<2x256xf32>
    %6 = tpu.matmul %4, %5, %cst_5 {dimension_numbers = #tpu.dot_dimension_numbers<[1], [0], [0], [1], [0, 0, 1, 1], [], []>} : vector<2x2048xbf16>, vector<2048x256xbf16>, vector<2x256xf32> -> vector<2x256xf32>
    %c0_6 = arith.constant 0 : index
    %c0_7 = arith.constant 0 : index
    %7 = vector.load %arg3[%c0_6, %c0_7] : memref<1x256xf32, #tpu.memory_space<vmem>>, vector<1x256xf32>
    %8 = vector.broadcast %7 : vector<1x256xf32> to vector<2x256xf32>
    %9 = arith.mulf %6, %8 : vector<2x256xf32>
    %c0_8 = arith.constant 0 : index
    %c0_9 = arith.constant 0 : index
    %10 = vector.load %arg4[%c0_8, %c0_9] : memref<1x256xf32, #tpu.memory_space<vmem>>, vector<1x256xf32>
    %11 = vector.broadcast %10 : vector<1x256xf32> to vector<2x256xf32>
    %12 = arith.addf %9, %11 : vector<2x256xf32>
    %cst_10 = arith.constant 0.000000e+00 : f32
    %13 = vector.broadcast %cst_10 : f32 to vector<2x256xf32>
    %14 = arith.cmpf oge, %12, %13 : vector<2x256xf32>
    %cst_11 = arith.constant 1.000000e-01 : f32
    %15 = vector.broadcast %cst_11 : f32 to vector<2x256xf32>
    %16 = arith.mulf %15, %12 : vector<2x256xf32>
    %17 = arith.select %14, %12, %16 : vector<2x256xi1>, vector<2x256xf32>
    %c0_12 = arith.constant 0 : index
    %c0_13 = arith.constant 0 : index
    %18 = vector.load %arg5[%c0_12, %c0_13] : memref<2x256xf32, #tpu.memory_space<vmem>>, vector<2x256xf32>
    tpu.vector_store %arg5[%c0_12, %c0_13], %17 {strides = array<i32>} : memref<2x256xf32, #tpu.memory_space<vmem>>, vector<2x256xf32>,
    return
  }
  func.func @transform_0(%arg0: i32) -> (i32, i32, i32) {
    %c0_i32 = arith.constant 0 : i32
    %c0_i32_0 = arith.constant 0 : i32
    %c0_i32_1 = arith.constant 0 : i32
    %c0_i32_2 = arith.constant 0 : i32
    return %c0_i32, %c0_i32_0, %c0_i32_1 : i32, i32, i32
  }
  func.func @transform_1(%arg0: i32) -> (i32, i32) {
    %c0_i32 = arith.constant 0 : i32
    %c0_i32_0 = arith.constant 0 : i32
    return %c0_i32, %arg0 : i32, i32
  }
  func.func @transform_2(%arg0: i32) -> (i32, i32) {
    %c0_i32 = arith.constant 0 : i32
    %c0_i32_0 = arith.constant 0 : i32
    return %c0_i32, %arg0 : i32, i32
  }
  func.func @transform_3(%arg0: i32) -> (i32, i32) {
    %c0_i32 = arith.constant 0 : i32
    %c0_i32_0 = arith.constant 0 : i32
    return %c0_i32, %arg0 : i32, i32
  }
  func.func @transform_4(%arg0: i32) -> (i32, i32) {
    %c0_i32 = arith.constant 0 : i32
    %c0_i32_0 = arith.constant 0 : i32
    return %c0_i32, %arg0 : i32, i32
  }
}

</mosaic_0001>

<bundles_post_ra>
// kernel: ftnet_hr_head.1
= control target key start
LH: loop header
LB: loop body
LE: loop exit
PB: predicated region body
PF: predicated region fallthrough
CT: control target
= control target key end

     0   :  { %9 = vsyncpa [#allocation4], 0  ;;  %s5518_s0 = inlined_call_operand.vmem [shape: f32[2,8,2048], index: 0, kind: input, shape index: {}]   ;;  %s5519_s1 = inlined_call_operand.vmem [shape: bf16[2048,512], index: 1, kind: input, shape index: {}]   ;;  %s5520_s2 = inlined_call_operand.vmem [shape: f32[1,512], index: 2, kind: input, shape index: {}]   ;;  %s5521_s3 = inlined_call_operand.vmem [shape: f32[1,512], index: 3, kind: input, shape index: {}]   ;;  %s5522_s4 = inlined_call_operand.hbm [shape: f32[2,512], index: 4, kind: output, shape index: {}]  }
   0x1   :  { %11 = vsyncpa [#allocation4 + $0x1], 0  ;;  %s4515_s15 = smov 0   ;;  %s4517_s16 = smov 0  }
   0x2   :  { %s4519_s17 = smov 0   ;;  %s4521_s18 = smov 0  }
   0x3 LB: > { %s4536_s19 = sadd.s32 4294967295, %s4487_s18   ;;  %s3701_s20 = sadd.s32 4294967294, %s4487_s18   ;;  %s4487_s18 = sphi %s4521_s18, %s5528_s18   ;;  %s4483_s17 = sphi %s4519_s17, %s5527_s17   ;;  %s4479_s16 = sphi %s4517_s16, %s5526_s16   ;;  %s4475_s15 = sphi %s4515_s15, %s5525_s15  }
   0x4   : > { %s4540_s21 = sadd.s32 1, %s4487_s18   ;;  %s45_s22 = sadd.s32 1, %s4483_s17 }
   0x5   : > { %s42_s23 = ssub.s32 %s4487_s18, %s4540_s21  ;;  %p52_p0 = scmp.ne.s32.totalorder %s4483_s17, %s4479_s16 }
   0x6   : > { %p43_p1 = scmp.eq.s32.totalorder %s42_s23, 0  ;;  %p53_p2 = scmp.eq.s32.totalorder %s4487_s18, 0 }
   0x7   : > { %p134_p3 = scmp.eq.s32.totalorder %s4536_s19, 1  ;;  %p139_p4 = scmp.ne.s32.totalorder %s4479_s16, %s4475_s15 }
   0x8   : > { %s4552_s24 = scalar_select %p43_p1, %s4483_s17, %s45_s22  }
   0x9   : > { %p54_p5 = por %p53_p2, %p52_p0  ;;  %p4554_p6 = por %p134_p3, %p52_p0 }
   0xa   : > { %p140_p7 = scmp.eq.s32.totalorder %s3701_s20, 1  ;;  %p3703_p9 = scmp.ge.s32.totalorder %s4487_s18, 2 }
   0xc   : > { %p4558_p8 = por %p140_p7, %p139_p4  ;;  %159 = sbr.rel (%p3703_p9) target bundleno = 151 (0x97), region = 20 }
  0x13   : > { %162 = sbr.rel (!%p54_p5) target bundleno = 151 (0x97), region = 24  ;;  %s164_s27 = sand.u32 (%p54_p5), 1, %s4483_s17  }
  0x14   : > { %s3974_s28 = sshll.u32 (%p54_p5), %s4487_s18, 3  ;;  %s3704_s29 = sshll.u32 (%p54_p5), %s164_s27, 11 }
  0x15   : > { %s4570_s6 = scalar_lea.vmem (%p54_p5), %s5519_s1, %s3974_s28  ;;  %s4575_s7 = scalar_lea.vmem (%p54_p5), [#allocation2], %s3704_s29 }
  0x16   : > { %v707_v0 = vld [vmem:[%s4570_s6] sm:$0xff] (%p54_p5)  ;;  %v709_v1 = vld [vmem:[%s4570_s6 + $0x10] sm:$0xff] (%p54_p5) }
  0x17   : > { %v711_v2 = vld [vmem:[%s4570_s6 + $0x20] sm:$0xff] (%p54_p5)  ;;  %708 = vst [vmem:[%s4575_s7] sm:$0xff] (%p54_p5), %v707_v0  ;;  %710 = vst [vmem:[%s4575_s7 + $0x8] sm:$0xff] (%p54_p5), %v709_v1  ;;  %v713_v3 = vld [vmem:[%s4570_s6 + $0x30] sm:$0xff] (%p54_p5) }
  0x18   : > { %712 = vst [vmem:[%s4575_s7 + $0x10] sm:$0xff] (%p54_p5), %v711_v2  ;;  %v715_v4 = vld [vmem:[%s4570_s6 + $0x40] sm:$0xff] (%p54_p5)  ;;  %v717_v5 = vld [vmem:[%s4570_s6 + $0x50] sm:$0xff] (%p54_p5)  ;;  %714 = vst [vmem:[%s4575_s7 + $0x18] sm:$0xff] (%p54_p5), %v713_v3 }
  0x19   : > { %716 = vst [vmem:[%s4575_s7 + $0x20] sm:$0xff] (%p54_p5), %v715_v4  ;;  %718 = vst [vmem:[%s4575_s7 + $0x28] sm:$0xff] (%p54_p5), %v717_v5  ;;  %v719_v6 = vld [vmem:[%s4570_s6 + $0x60] sm:$0xff] (%p54_p5)  ;;  %v721_v7 = vld [vmem:[%s4570_s6 + $0x70] sm:$0xff] (%p54_p5) }
  0x1a   : > { %v723_v8 = vld [vmem:[%s4570_s6 + $0x80] sm:$0xff]  ;;  %720 = vst [vmem:[%s4575_s7 + $0x30] sm:$0xff] %v719_v6  ;;  %722 = vst [vmem:[%s4575_s7 + $0x38] sm:$0xff] %v721_v7  ;;  %v725_v9 = vld [vmem:[%s4570_s6 + $0x90] sm:$0xff] }
  0x1b   : > { %724 = vst [vmem:[%s4575_s7 + $0x40] sm:$0xff] %v723_v8  ;;  %v727_v10 = vld [vmem:[%s4570_s6 + $0xa0] sm:$0xff]  ;;  %v729_v11 = vld [vmem:[%s4570_s6 + $0xb0] sm:$0xff]  ;;  %726 = vst [vmem:[%s4575_s7 + $0x48] sm:$0xff] %v725_v9 }
  0x1c   : > { %728 = vst [vmem:[%s4575_s7 + $0x50] sm:$0xff] %v727_v10  ;;  %730 = vst [vmem:[%s4575_s7 + $0x58] sm:$0xff] %v729_v11  ;;  %v731_v12 = vld [vmem:[%s4570_s6 + $0xc0] sm:$0xff]  ;;  %v733_v13 = vld [vmem:[%s4570_s6 + $0xd0] sm:$0xff] }
  0x1d   : > { %v735_v14 = vld [vmem:[%s4570_s6 + $0xe0] sm:$0xff]  ;;  %732 = vst [vmem:[%s4575_s7 + $0x60] sm:$0xff] %v731_v12  ;;  %734 = vst [vmem:[%s4575_s7 + $0x68] sm:$0xff] %v733_v13  ;;  %v737_v15 = vld [vmem:[%s4570_s6 + $0xf0] sm:$0xff] }
  0x1e   : > { %736 = vst [vmem:[%s4575_s7 + $0x70] sm:$0xff] %v735_v14  ;;  %v739_v16 = vld [vmem:[%s4570_s6 + $0x100] sm:$0xff]  ;;  %v741_v17 = vld [vmem:[%s4570_s6 + $0x110] sm:$0xff]  ;;  %738 = vst [vmem:[%s4575_s7 + $0x78] sm:$0xff] %v737_v15 }
  0x1f   : > { %740 = vst [vmem:[%s4575_s7 + $0x80] sm:$0xff] %v739_v16  ;;  %742 = vst [vmem:[%s4575_s7 + $0x88] sm:$0xff] %v741_v17  ;;  %v743_v18 = vld [vmem:[%s4570_s6 + $0x120] sm:$0xff]  ;;  %v745_v19 = vld [vmem:[%s4570_s6 + $0x130] sm:$0xff] }
  0x20   : > { %v747_v20 = vld [vmem:[%s4570_s6 + $0x140] sm:$0xff]  ;;  %744 = vst [vmem:[%s4575_s7 + $0x90] sm:$0xff] %v743_v18  ;;  %746 = vst [vmem:[%s4575_s7 + $0x98] sm:$0xff] %v745_v19  ;;  %v749_v21 = vld [vmem:[%s4570_s6 + $0x150] sm:$0xff] }
  0x21   : > { %748 = vst [vmem:[%s4575_s7 + $0xa0] sm:$0xff] %v747_v20  ;;  %v751_v22 = vld [vmem:[%s4570_s6 + $0x160] sm:$0xff]  ;;  %v753_v23 = vld [vmem:[%s4570_s6 + $0x170] sm:$0xff]  ;;  %750 = vst [vmem:[%s4575_s7 + $0xa8] sm:$0xff] %v749_v21 }
  0x22   : > { %752 = vst [vmem:[%s4575_s7 + $0xb0] sm:$0xff] %v751_v22  ;;  %754 = vst [vmem:[%s4575_s7 + $0xb8] sm:$0xff] %v753_v23  ;;  %v755_v24 = vld [vmem:[%s4570_s6 + $0x180] sm:$0xff]  ;;  %v757_v25 = vld [vmem:[%s4570_s6 + $0x190] sm:$0xff] }
  0x23   : > { %v759_v26 = vld [vmem:[%s4570_s6 + $0x1a0] sm:$0xff]  ;;  %756 = vst [vmem:[%s4575_s7 + $0xc0] sm:$0xff] %v755_v24  ;;  %758 = vst [vmem:[%s4575_s7 + $0xc8] sm:$0xff] %v757_v25  ;;  %v761_v27 = vld [vmem:[%s4570_s6 + $0x1b0] sm:$0xff] }
  0x24   : > { %760 = vst [vmem:[%s4575_s7 + $0xd0] sm:$0xff] %v759_v26  ;;  %v763_v28 = vld [vmem:[%s4570_s6 + $0x1c0] sm:$0xff]  ;;  %v765_v29 = vld [vmem:[%s4570_s6 + $0x1d0] sm:$0xff]  ;;  %762 = vst [vmem:[%s4575_s7 + $0xd8] sm:$0xff] %v761_v27 }
  0x25   : > { %764 = vst [vmem:[%s4575_s7 + $0xe0] sm:$0xff] %v763_v28  ;;  %766 = vst [vmem:[%s4575_s7 + $0xe8] sm:$0xff] %v765_v29  ;;  %v767_v30 = vld [vmem:[%s4570_s6 + $0x1e0] sm:$0xff]  ;;  %v769_v31 = vld [vmem:[%s4570_s6 + $0x1f0] sm:$0xff] }
  0x26   : > { %v771_v32 = vld [vmem:[%s4570_s6 + $0x200] sm:$0xff]  ;;  %768 = vst [vmem:[%s4575_s7 + $0xf0] sm:$0xff] %v767_v30  ;;  %770 = vst [vmem:[%s4575_s7 + $0xf8] sm:$0xff] %v769_v31  ;;  %v773_v33 = vld [vmem:[%s4570_s6 + $0x210] sm:$0xff] }
  0x27   : > { %772 = vst [vmem:[%s4575_s7 + $0x100] sm:$0xff] %v771_v32  ;;  %v775_v34 = vld [vmem:[%s4570_s6 + $0x220] sm:$0xff]  ;;  %v777_v35 = vld [vmem:[%s4570_s6 + $0x230] sm:$0xff]  ;;  %774 = vst [vmem:[%s4575_s7 + $0x108] sm:$0xff] %v773_v33 }
  0x28   : > { %776 = vst [vmem:[%s4575_s7 + $0x110] sm:$0xff] %v775_v34  ;;  %778 = vst [vmem:[%s4575_s7 + $0x118] sm:$0xff] %v777_v35  ;;  %v779_v36 = vld [vmem:[%s4570_s6 + $0x240] sm:$0xff]  ;;  %v781_v37 = vld [vmem:[%s4570_s6 + $0x250] sm:$0xff] }
  0x29   : > { %v783_v38 = vld [vmem:[%s4570_s6 + $0x260] sm:$0xff]  ;;  %780 = vst [vmem:[%s4575_s7 + $0x120] sm:$0xff] %v779_v36  ;;  %782 = vst [vmem:[%s4575_s7 + $0x128] sm:$0xff] %v781_v37  ;;  %v785_v39 = vld [vmem:[%s4570_s6 + $0x270] sm:$0xff] }
  0x2a   : > { %784 = vst [vmem:[%s4575_s7 + $0x130] sm:$0xff] %v783_v38  ;;  %v787_v40 = vld [vmem:[%s4570_s6 + $0x280] sm:$0xff]  ;;  %v789_v41 = vld [vmem:[%s4570_s6 + $0x290] sm:$0xff]  ;;  %786 = vst [vmem:[%s4575_s7 + $0x138] sm:$0xff] %v785_v39 }
  0x2b   : > { %788 = vst [vmem:[%s4575_s7 + $0x140] sm:$0xff] %v787_v40  ;;  %790 = vst [vmem:[%s4575_s7 + $0x148] sm:$0xff] %v789_v41  ;;  %v791_v42 = vld [vmem:[%s4570_s6 + $0x2a0] sm:$0xff]  ;;  %v793_v43 = vld [vmem:[%s4570_s6 + $0x2b0] sm:$0xff] }
  0x2c   : > { %v795_v44 = vld [vmem:[%s4570_s6 + $0x2c0] sm:$0xff]  ;;  %792 = vst [vmem:[%s4575_s7 + $0x150] sm:$0xff] %v791_v42  ;;  %794 = vst [vmem:[%s4575_s7 + $0x158] sm:$0xff] %v793_v43  ;;  %v797_v45 = vld [vmem:[%s4570_s6 + $0x2d0] sm:$0xff] }
  0x2d   : > { %796 = vst [vmem:[%s4575_s7 + $0x160] sm:$0xff] %v795_v44  ;;  %v799_v46 = vld [vmem:[%s4570_s6 + $0x2e0] sm:$0xff]  ;;  %v801_v47 = vld [vmem:[%s4570_s6 + $0x2f0] sm:$0xff]  ;;  %798 = vst [vmem:[%s4575_s7 + $0x168] sm:$0xff] %v797_v45 }
  0x2e   : > { %800 = vst [vmem:[%s4575_s7 + $0x170] sm:$0xff] %v799_v46  ;;  %802 = vst [vmem:[%s4575_s7 + $0x178] sm:$0xff] %v801_v47  ;;  %v803_v48 = vld [vmem:[%s4570_s6 + $0x300] sm:$0xff]  ;;  %v805_v49 = vld [vmem:[%s4570_s6 + $0x310] sm:$0xff] }
  0x2f   : > { %v807_v50 = vld [vmem:[%s4570_s6 + $0x320] sm:$0xff]  ;;  %804 = vst [vmem:[%s4575_s7 + $0x180] sm:$0xff] %v803_v48  ;;  %806 = vst [vmem:[%s4575_s7 + $0x188] sm:$0xff] %v805_v49  ;;  %v809_v51 = vld [vmem:[%s4570_s6 + $0x330] sm:$0xff] }
  0x30   : > { %808 = vst [vmem:[%s4575_s7 + $0x190] sm:$0xff] %v807_v50  ;;  %v811_v52 = vld [vmem:[%s4570_s6 + $0x340] sm:$0xff]  ;;  %v813_v53 = vld [vmem:[%s4570_s6 + $0x350] sm:$0xff]  ;;  %810 = vst [vmem:[%s4575_s7 + $0x198] sm:$0xff] %v809_v51 }
  0x31   : > { %812 = vst [vmem:[%s4575_s7 + $0x1a0] sm:$0xff] %v811_v52  ;;  %814 = vst [vmem:[%s4575_s7 + $0x1a8] sm:$0xff] %v813_v53  ;;  %v815_v54 = vld [vmem:[%s4570_s6 + $0x360] sm:$0xff]  ;;  %v817_v55 = vld [vmem:[%s4570_s6 + $0x370] sm:$0xff] }
  0x32   : > { %v819_v56 = vld [vmem:[%s4570_s6 + $0x380] sm:$0xff]  ;;  %816 = vst [vmem:[%s4575_s7 + $0x1b0] sm:$0xff] %v815_v54  ;;  %818 = vst [vmem:[%s4575_s7 + $0x1b8] sm:$0xff] %v817_v55  ;;  %v821_v57 = vld [vmem:[%s4570_s6 + $0x390] sm:$0xff] }
  0x33   : > { %820 = vst [vmem:[%s4575_s7 + $0x1c0] sm:$0xff] %v819_v56  ;;  %v823_v58 = vld [vmem:[%s4570_s6 + $0x3a0] sm:$0xff]  ;;  %v825_v59 = vld [vmem:[%s4570_s6 + $0x3b0] sm:$0xff]  ;;  %822 = vst [vmem:[%s4575_s7 + $0x1c8] sm:$0xff] %v821_v57 }
  0x34   : > { %824 = vst [vmem:[%s4575_s7 + $0x1d0] sm:$0xff] %v823_v58  ;;  %826 = vst [vmem:[%s4575_s7 + $0x1d8] sm:$0xff] %v825_v59  ;;  %v827_v60 = vld [vmem:[%s4570_s6 + $0x3c0] sm:$0xff]  ;;  %v829_v61 = vld [vmem:[%s4570_s6 + $0x3d0] sm:$0xff] }
  0x35   : > { %v831_v62 = vld [vmem:[%s4570_s6 + $0x3e0] sm:$0xff]  ;;  %828 = vst [vmem:[%s4575_s7 + $0x1e0] sm:$0xff] %v827_v60  ;;  %830 = vst [vmem:[%s4575_s7 + $0x1e8] sm:$0xff] %v829_v61  ;;  %v833_v63 = vld [vmem:[%s4570_s6 + $0x3f0] sm:$0xff] }
  0x36   : > { %832 = vst [vmem:[%s4575_s7 + $0x1f0] sm:$0xff] %v831_v62  ;;  %v835_v0 = vld [vmem:[%s4570_s6 + $0x400] sm:$0xff]  ;;  %v837_v1 = vld [vmem:[%s4570_s6 + $0x410] sm:$0xff]  ;;  %834 = vst [vmem:[%s4575_s7 + $0x1f8] sm:$0xff] %v833_v63 }
  0x37   : > { %836 = vst [vmem:[%s4575_s7 + $0x200] sm:$0xff] %v835_v0  ;;  %838 = vst [vmem:[%s4575_s7 + $0x208] sm:$0xff] %v837_v1  ;;  %v839_v2 = vld [vmem:[%s4570_s6 + $0x420] sm:$0xff]  ;;  %v841_v3 = vld [vmem:[%s4570_s6 + $0x430] sm:$0xff] }
  0x38   : > { %v843_v4 = vld [vmem:[%s4570_s6 + $0x440] sm:$0xff]  ;;  %840 = vst [vmem:[%s4575_s7 + $0x210] sm:$0xff] %v839_v2  ;;  %842 = vst [vmem:[%s4575_s7 + $0x218] sm:$0xff] %v841_v3  ;;  %v845_v5 = vld [vmem:[%s4570_s6 + $0x450] sm:$0xff] }
  0x39   : > { %844 = vst [vmem:[%s4575_s7 + $0x220] sm:$0xff] %v843_v4  ;;  %v847_v6 = vld [vmem:[%s4570_s6 + $0x460] sm:$0xff]  ;;  %v849_v7 = vld [vmem:[%s4570_s6 + $0x470] sm:$0xff]  ;;  %846 = vst [vmem:[%s4575_s7 + $0x228] sm:$0xff] %v845_v5 }
  0x3a   : > { %848 = vst [vmem:[%s4575_s7 + $0x230] sm:$0xff] %v847_v6  ;;  %850 = vst [vmem:[%s4575_s7 + $0x238] sm:$0xff] %v849_v7  ;;  %v851_v8 = vld [vmem:[%s4570_s6 + $0x480] sm:$0xff]  ;;  %v853_v9 = vld [vmem:[%s4570_s6 + $0x490] sm:$0xff] }
  0x3b   : > { %v855_v10 = vld [vmem:[%s4570_s6 + $0x4a0] sm:$0xff]  ;;  %852 = vst [vmem:[%s4575_s7 + $0x240] sm:$0xff] %v851_v8  ;;  %854 = vst [vmem:[%s4575_s7 + $0x248] sm:$0xff] %v853_v9  ;;  %v857_v11 = vld [vmem:[%s4570_s6 + $0x4b0] sm:$0xff] }
  0x3c   : > { %856 = vst [vmem:[%s4575_s7 + $0x250] sm:$0xff] %v855_v10  ;;  %v859_v12 = vld [vmem:[%s4570_s6 + $0x4c0] sm:$0xff]  ;;  %v861_v13 = vld [vmem:[%s4570_s6 + $0x4d0] sm:$0xff]  ;;  %858 = vst [vmem:[%s4575_s7 + $0x258] sm:$0xff] %v857_v11 }
  0x3d   : > { %860 = vst [vmem:[%s4575_s7 + $0x260] sm:$0xff] %v859_v12  ;;  %862 = vst [vmem:[%s4575_s7 + $0x268] sm:$0xff] %v861_v13  ;;  %v863_v14 = vld [vmem:[%s4570_s6 + $0x4e0] sm:$0xff]  ;;  %v865_v15 = vld [vmem:[%s4570_s6 + $0x4f0] sm:$0xff] }
  0x3e   : > { %v867_v16 = vld [vmem:[%s4570_s6 + $0x500] sm:$0xff]  ;;  %864 = vst [vmem:[%s4575_s7 + $0x270] sm:$0xff] %v863_v14  ;;  %866 = vst [vmem:[%s4575_s7 + $0x278] sm:$0xff] %v865_v15  ;;  %v869_v17 = vld [vmem:[%s4570_s6 + $0x510] sm:$0xff] }
  0x3f   : > { %868 = vst [vmem:[%s4575_s7 + $0x280] sm:$0xff] %v867_v16  ;;  %v871_v18 = vld [vmem:[%s4570_s6 + $0x520] sm:$0xff]  ;;  %v873_v19 = vld [vmem:[%s4570_s6 + $0x530] sm:$0xff]  ;;  %870 = vst [vmem:[%s4575_s7 + $0x288] sm:$0xff] %v869_v17 }
  0x40   : > { %872 = vst [vmem:[%s4575_s7 + $0x290] sm:$0xff] %v871_v18  ;;  %874 = vst [vmem:[%s4575_s7 + $0x298] sm:$0xff] %v873_v19  ;;  %v875_v20 = vld [vmem:[%s4570_s6 + $0x540] sm:$0xff]  ;;  %v877_v21 = vld [vmem:[%s4570_s6 + $0x550] sm:$0xff] }
  0x41   : > { %v879_v22 = vld [vmem:[%s4570_s6 + $0x560] sm:$0xff]  ;;  %876 = vst [vmem:[%s4575_s7 + $0x2a0] sm:$0xff] %v875_v20  ;;  %878 = vst [vmem:[%s4575_s7 + $0x2a8] sm:$0xff] %v877_v21  ;;  %v881_v23 = vld [vmem:[%s4570_s6 + $0x570] sm:$0xff] }
  0x42   : > { %880 = vst [vmem:[%s4575_s7 + $0x2b0] sm:$0xff] %v879_v22  ;;  %v883_v24 = vld [vmem:[%s4570_s6 + $0x580] sm:$0xff]  ;;  %v885_v25 = vld [vmem:[%s4570_s6 + $0x590] sm:$0xff]  ;;  %882 = vst [vmem:[%s4575_s7 + $0x2b8] sm:$0xff] %v881_v23 }
  0x43   : > { %884 = vst [vmem:[%s4575_s7 + $0x2c0] sm:$0xff] %v883_v24  ;;  %886 = vst [vmem:[%s4575_s7 + $0x2c8] sm:$0xff] %v885_v25  ;;  %v887_v26 = vld [vmem:[%s4570_s6 + $0x5a0] sm:$0xff]  ;;  %v889_v27 = vld [vmem:[%s4570_s6 + $0x5b0] sm:$0xff] }
  0x44   : > { %v891_v28 = vld [vmem:[%s4570_s6 + $0x5c0] sm:$0xff]  ;;  %888 = vst [vmem:[%s4575_s7 + $0x2d0] sm:$0xff] %v887_v26  ;;  %890 = vst [vmem:[%s4575_s7 + $0x2d8] sm:$0xff] %v889_v27  ;;  %v893_v29 = vld [vmem:[%s4570_s6 + $0x5d0] sm:$0xff] }
  0x45   : > { %892 = vst [vmem:[%s4575_s7 + $0x2e0] sm:$0xff] %v891_v28  ;;  %v895_v30 = vld [vmem:[%s4570_s6 + $0x5e0] sm:$0xff]  ;;  %v897_v31 = vld [vmem:[%s4570_s6 + $0x5f0] sm:$0xff]  ;;  %894 = vst [vmem:[%s4575_s7 + $0x2e8] sm:$0xff] %v893_v29 }
  0x46   : > { %896 = vst [vmem:[%s4575_s7 + $0x2f0] sm:$0xff] %v895_v30  ;;  %898 = vst [vmem:[%s4575_s7 + $0x2f8] sm:$0xff] %v897_v31  ;;  %v899_v32 = vld [vmem:[%s4570_s6 + $0x600] sm:$0xff]  ;;  %v901_v33 = vld [vmem:[%s4570_s6 + $0x610] sm:$0xff] }
  0x47   : > { %v903_v34 = vld [vmem:[%s4570_s6 + $0x620] sm:$0xff]  ;;  %900 = vst [vmem:[%s4575_s7 + $0x300] sm:$0xff] %v899_v32  ;;  %902 = vst [vmem:[%s4575_s7 + $0x308] sm:$0xff] %v901_v33  ;;  %v905_v35 = vld [vmem:[%s4570_s6 + $0x630] sm:$0xff] }
  0x48   : > { %904 = vst [vmem:[%s4575_s7 + $0x310] sm:$0xff] %v903_v34  ;;  %v907_v36 = vld [vmem:[%s4570_s6 + $0x640] sm:$0xff]  ;;  %v909_v37 = vld [vmem:[%s4570_s6 + $0x650] sm:$0xff]  ;;  %906 = vst [vmem:[%s4575_s7 + $0x318] sm:$0xff] %v905_v35 }
  0x49   : > { %908 = vst [vmem:[%s4575_s7 + $0x320] sm:$0xff] %v907_v36  ;;  %910 = vst [vmem:[%s4575_s7 + $0x328] sm:$0xff] %v909_v37  ;;  %v911_v38 = vld [vmem:[%s4570_s6 + $0x660] sm:$0xff]  ;;  %v913_v39 = vld [vmem:[%s4570_s6 + $0x670] sm:$0xff] }
  0x4a   : > { %v915_v40 = vld [vmem:[%s4570_s6 + $0x680] sm:$0xff]  ;;  %912 = vst [vmem:[%s4575_s7 + $0x330] sm:$0xff] %v911_v38  ;;  %914 = vst [vmem:[%s4575_s7 + $0x338] sm:$0xff] %v913_v39  ;;  %v917_v41 = vld [vmem:[%s4570_s6 + $0x690] sm:$0xff] }
  0x4b   : > { %916 = vst [vmem:[%s4575_s7 + $0x340] sm:$0xff] %v915_v40  ;;  %v919_v42 = vld [vmem:[%s4570_s6 + $0x6a0] sm:$0xff]  ;;  %v921_v43 = vld [vmem:[%s4570_s6 + $0x6b0] sm:$0xff]  ;;  %918 = vst [vmem:[%s4575_s7 + $0x348] sm:$0xff] %v917_v41 }
  0x4c   : > { %920 = vst [vmem:[%s4575_s7 + $0x350] sm:$0xff] %v919_v42  ;;  %922 = vst [vmem:[%s4575_s7 + $0x358] sm:$0xff] %v921_v43  ;;  %v923_v44 = vld [vmem:[%s4570_s6 + $0x6c0] sm:$0xff]  ;;  %v925_v45 = vld [vmem:[%s4570_s6 + $0x6d0] sm:$0xff] }
  0x4d   : > { %v927_v46 = vld [vmem:[%s4570_s6 + $0x6e0] sm:$0xff]  ;;  %924 = vst [vmem:[%s4575_s7 + $0x360] sm:$0xff] %v923_v44  ;;  %926 = vst [vmem:[%s4575_s7 + $0x368] sm:$0xff] %v925_v45  ;;  %v929_v47 = vld [vmem:[%s4570_s6 + $0x6f0] sm:$0xff] }
  0x4e   : > { %928 = vst [vmem:[%s4575_s7 + $0x370] sm:$0xff] %v927_v46  ;;  %v931_v48 = vld [vmem:[%s4570_s6 + $0x700] sm:$0xff]  ;;  %v933_v49 = vld [vmem:[%s4570_s6 + $0x710] sm:$0xff]  ;;  %930 = vst [vmem:[%s4575_s7 + $0x378] sm:$0xff] %v929_v47 }
  0x4f   : > { %932 = vst [vmem:[%s4575_s7 + $0x380] sm:$0xff] %v931_v48  ;;  %934 = vst [vmem:[%s4575_s7 + $0x388] sm:$0xff] %v933_v49  ;;  %v935_v50 = vld [vmem:[%s4570_s6 + $0x720] sm:$0xff]  ;;  %v937_v51 = vld [vmem:[%s4570_s6 + $0x730] sm:$0xff] }
  0x50   : > { %v939_v52 = vld [vmem:[%s4570_s6 + $0x740] sm:$0xff]  ;;  %936 = vst [vmem:[%s4575_s7 + $0x390] sm:$0xff] %v935_v50  ;;  %938 = vst [vmem:[%s4575_s7 + $0x398] sm:$0xff] %v937_v51  ;;  %v941_v53 = vld [vmem:[%s4570_s6 + $0x750] sm:$0xff] }
  0x51   : > { %940 = vst [vmem:[%s4575_s7 + $0x3a0] sm:$0xff] %v939_v52  ;;  %v943_v54 = vld [vmem:[%s4570_s6 + $0x760] sm:$0xff]  ;;  %v945_v55 = vld [vmem:[%s4570_s6 + $0x770] sm:$0xff]  ;;  %942 = vst [vmem:[%s4575_s7 + $0x3a8] sm:$0xff] %v941_v53 }
  0x52   : > { %944 = vst [vmem:[%s4575_s7 + $0x3b0] sm:$0xff] %v943_v54  ;;  %946 = vst [vmem:[%s4575_s7 + $0x3b8] sm:$0xff] %v945_v55  ;;  %v947_v56 = vld [vmem:[%s4570_s6 + $0x780] sm:$0xff]  ;;  %v949_v57 = vld [vmem:[%s4570_s6 + $0x790] sm:$0xff] }
  0x53   : > { %v951_v58 = vld [vmem:[%s4570_s6 + $0x7a0] sm:$0xff]  ;;  %948 = vst [vmem:[%s4575_s7 + $0x3c0] sm:$0xff] %v947_v56  ;;  %950 = vst [vmem:[%s4575_s7 + $0x3c8] sm:$0xff] %v949_v57  ;;  %v953_v59 = vld [vmem:[%s4570_s6 + $0x7b0] sm:$0xff] }
  0x54   : > { %952 = vst [vmem:[%s4575_s7 + $0x3d0] sm:$0xff] %v951_v58  ;;  %v955_v60 = vld [vmem:[%s4570_s6 + $0x7c0] sm:$0xff]  ;;  %v957_v61 = vld [vmem:[%s4570_s6 + $0x7d0] sm:$0xff]  ;;  %954 = vst [vmem:[%s4575_s7 + $0x3d8] sm:$0xff] %v953_v59 }
  0x55   : > { %956 = vst [vmem:[%s4575_s7 + $0x3e0] sm:$0xff] %v955_v60  ;;  %958 = vst [vmem:[%s4575_s7 + $0x3e8] sm:$0xff] %v957_v61  ;;  %v959_v62 = vld [vmem:[%s4570_s6 + $0x7e0] sm:$0xff]  ;;  %v961_v63 = vld [vmem:[%s4570_s6 + $0x7f0] sm:$0xff] }
  0x56   : > { %v963_v0 = vld [vmem:[%s4570_s6 + $0x800] sm:$0xff]  ;;  %960 = vst [vmem:[%s4575_s7 + $0x3f0] sm:$0xff] %v959_v62  ;;  %962 = vst [vmem:[%s4575_s7 + $0x3f8] sm:$0xff] %v961_v63  ;;  %v965_v1 = vld [vmem:[%s4570_s6 + $0x810] sm:$0xff] }
  0x57   : > { %964 = vst [vmem:[%s4575_s7 + $0x400] sm:$0xff] %v963_v0  ;;  %v967_v2 = vld [vmem:[%s4570_s6 + $0x820] sm:$0xff]  ;;  %v969_v3 = vld [vmem:[%s4570_s6 + $0x830] sm:$0xff]  ;;  %966 = vst [vmem:[%s4575_s7 + $0x408] sm:$0xff] %v965_v1 }
  0x58   : > { %968 = vst [vmem:[%s4575_s7 + $0x410] sm:$0xff] %v967_v2  ;;  %970 = vst [vmem:[%s4575_s7 + $0x418] sm:$0xff] %v969_v3  ;;  %v971_v4 = vld [vmem:[%s4570_s6 + $0x840] sm:$0xff]  ;;  %v973_v5 = vld [vmem:[%s4570_s6 + $0x850] sm:$0xff] }
  0x59   : > { %v975_v6 = vld [vmem:[%s4570_s6 + $0x860] sm:$0xff]  ;;  %972 = vst [vmem:[%s4575_s7 + $0x420] sm:$0xff] %v971_v4  ;;  %974 = vst [vmem:[%s4575_s7 + $0x428] sm:$0xff] %v973_v5  ;;  %v977_v7 = vld [vmem:[%s4570_s6 + $0x870] sm:$0xff] }
  0x5a   : > { %976 = vst [vmem:[%s4575_s7 + $0x430] sm:$0xff] %v975_v6  ;;  %v979_v8 = vld [vmem:[%s4570_s6 + $0x880] sm:$0xff]  ;;  %v981_v9 = vld [vmem:[%s4570_s6 + $0x890] sm:$0xff]  ;;  %978 = vst [vmem:[%s4575_s7 + $0x438] sm:$0xff] %v977_v7 }
  0x5b   : > { %980 = vst [vmem:[%s4575_s7 + $0x440] sm:$0xff] %v979_v8  ;;  %982 = vst [vmem:[%s4575_s7 + $0x448] sm:$0xff] %v981_v9  ;;  %v983_v10 = vld [vmem:[%s4570_s6 + $0x8a0] sm:$0xff]  ;;  %v985_v11 = vld [vmem:[%s4570_s6 + $0x8b0] sm:$0xff] }
  0x5c   : > { %v987_v12 = vld [vmem:[%s4570_s6 + $0x8c0] sm:$0xff]  ;;  %984 = vst [vmem:[%s4575_s7 + $0x450] sm:$0xff] %v983_v10  ;;  %986 = vst [vmem:[%s4575_s7 + $0x458] sm:$0xff] %v985_v11  ;;  %v989_v13 = vld [vmem:[%s4570_s6 + $0x8d0] sm:$0xff] }
  0x5d   : > { %988 = vst [vmem:[%s4575_s7 + $0x460] sm:$0xff] %v987_v12  ;;  %v991_v14 = vld [vmem:[%s4570_s6 + $0x8e0] sm:$0xff]  ;;  %v993_v15 = vld [vmem:[%s4570_s6 + $0x8f0] sm:$0xff]  ;;  %990 = vst [vmem:[%s4575_s7 + $0x468] sm:$0xff] %v989_v13 }
  0x5e   : > { %992 = vst [vmem:[%s4575_s7 + $0x470] sm:$0xff] %v991_v14  ;;  %994 = vst [vmem:[%s4575_s7 + $0x478] sm:$0xff] %v993_v15  ;;  %v995_v16 = vld [vmem:[%s4570_s6 + $0x900] sm:$0xff]  ;;  %v997_v17 = vld [vmem:[%s4570_s6 + $0x910] sm:$0xff] }
  0x5f   : > { %v999_v18 = vld [vmem:[%s4570_s6 + $0x920] sm:$0xff]  ;;  %996 = vst [vmem:[%s4575_s7 + $0x480] sm:$0xff] %v995_v16  ;;  %998 = vst [vmem:[%s4575_s7 + $0x488] sm:$0xff] %v997_v17  ;;  %v1001_v19 = vld [vmem:[%s4570_s6 + $0x930] sm:$0xff] }
  0x60   : > { %1000 = vst [vmem:[%s4575_s7 + $0x490] sm:$0xff] %v999_v18  ;;  %v1003_v20 = vld [vmem:[%s4570_s6 + $0x940] sm:$0xff]  ;;  %v1005_v21 = vld [vmem:[%s4570_s6 + $0x950] sm:$0xff]  ;;  %1002 = vst [vmem:[%s4575_s7 + $0x498] sm:$0xff] %v1001_v19 }
  0x61   : > { %1004 = vst [vmem:[%s4575_s7 + $0x4a0] sm:$0xff] %v1003_v20  ;;  %1006 = vst [vmem:[%s4575_s7 + $0x4a8] sm:$0xff] %v1005_v21  ;;  %v1007_v22 = vld [vmem:[%s4570_s6 + $0x960] sm:$0xff]  ;;  %v1009_v23 = vld [vmem:[%s4570_s6 + $0x970] sm:$0xff] }
  0x62   : > { %v1011_v24 = vld [vmem:[%s4570_s6 + $0x980] sm:$0xff]  ;;  %1008 = vst [vmem:[%s4575_s7 + $0x4b0] sm:$0xff] %v1007_v22  ;;  %1010 = vst [vmem:[%s4575_s7 + $0x4b8] sm:$0xff] %v1009_v23  ;;  %v1013_v25 = vld [vmem:[%s4570_s6 + $0x990] sm:$0xff] }
  0x63   : > { %1012 = vst [vmem:[%s4575_s7 + $0x4c0] sm:$0xff] %v1011_v24  ;;  %v1015_v26 = vld [vmem:[%s4570_s6 + $0x9a0] sm:$0xff]  ;;  %v1017_v27 = vld [vmem:[%s4570_s6 + $0x9b0] sm:$0xff]  ;;  %1014 = vst [vmem:[%s4575_s7 + $0x4c8] sm:$0xff] %v1013_v25 }
  0x64   : > { %1016 = vst [vmem:[%s4575_s7 + $0x4d0] sm:$0xff] %v1015_v26  ;;  %1018 = vst [vmem:[%s4575_s7 + $0x4d8] sm:$0xff] %v1017_v27  ;;  %v1019_v28 = vld [vmem:[%s4570_s6 + $0x9c0] sm:$0xff]  ;;  %v1021_v29 = vld [vmem:[%s4570_s6 + $0x9d0] sm:$0xff] }
  0x65   : > { %v1023_v30 = vld [vmem:[%s4570_s6 + $0x9e0] sm:$0xff]  ;;  %1020 = vst [vmem:[%s4575_s7 + $0x4e0] sm:$0xff] %v1019_v28  ;;  %1022 = vst [vmem:[%s4575_s7 + $0x4e8] sm:$0xff] %v1021_v29  ;;  %v1025_v31 = vld [vmem:[%s4570_s6 + $0x9f0] sm:$0xff] }
  0x66   : > { %1024 = vst [vmem:[%s4575_s7 + $0x4f0] sm:$0xff] %v1023_v30  ;;  %v1027_v32 = vld [vmem:[%s4570_s6 + $0xa00] sm:$0xff]  ;;  %v1029_v33 = vld [vmem:[%s4570_s6 + $0xa10] sm:$0xff]  ;;  %1026 = vst [vmem:[%s4575_s7 + $0x4f8] sm:$0xff] %v1025_v31 }
  0x67   : > { %1028 = vst [vmem:[%s4575_s7 + $0x500] sm:$0xff] %v1027_v32  ;;  %1030 = vst [vmem:[%s4575_s7 + $0x508] sm:$0xff] %v1029_v33  ;;  %v1031_v34 = vld [vmem:[%s4570_s6 + $0xa20] sm:$0xff]  ;;  %v1033_v35 = vld [vmem:[%s4570_s6 + $0xa30] sm:$0xff] }
  0x68   : > { %v1035_v36 = vld [vmem:[%s4570_s6 + $0xa40] sm:$0xff]  ;;  %1032 = vst [vmem:[%s4575_s7 + $0x510] sm:$0xff] %v1031_v34  ;;  %1034 = vst [vmem:[%s4575_s7 + $0x518] sm:$0xff] %v1033_v35  ;;  %v1037_v37 = vld [vmem:[%s4570_s6 + $0xa50] sm:$0xff] }
  0x69   : > { %1036 = vst [vmem:[%s4575_s7 + $0x520] sm:$0xff] %v1035_v36  ;;  %v1039_v38 = vld [vmem:[%s4570_s6 + $0xa60] sm:$0xff]  ;;  %v1041_v39 = vld [vmem:[%s4570_s6 + $0xa70] sm:$0xff]  ;;  %1038 = vst [vmem:[%s4575_s7 + $0x528] sm:$0xff] %v1037_v37 }
  0x6a   : > { %1040 = vst [vmem:[%s4575_s7 + $0x530] sm:$0xff] %v1039_v38  ;;  %1042 = vst [vmem:[%s4575_s7 + $0x538] sm:$0xff] %v1041_v39  ;;  %v1043_v40 = vld [vmem:[%s4570_s6 + $0xa80] sm:$0xff]  ;;  %v1045_v41 = vld [vmem:[%s4570_s6 + $0xa90] sm:$0xff] }
  0x6b   : > { %v1047_v42 = vld [vmem:[%s4570_s6 + $0xaa0] sm:$0xff]  ;;  %1044 = vst [vmem:[%s4575_s7 + $0x540] sm:$0xff] %v1043_v40  ;;  %1046 = vst [vmem:[%s4575_s7 + $0x548] sm:$0xff] %v1045_v41  ;;  %v1049_v43 = vld [vmem:[%s4570_s6 + $0xab0] sm:$0xff] }
  0x6c   : > { %1048 = vst [vmem:[%s4575_s7 + $0x550] sm:$0xff] %v1047_v42  ;;  %v1051_v44 = vld [vmem:[%s4570_s6 + $0xac0] sm:$0xff]  ;;  %v1053_v45 = vld [vmem:[%s4570_s6 + $0xad0] sm:$0xff]  ;;  %1050 = vst [vmem:[%s4575_s7 + $0x558] sm:$0xff] %v1049_v43 }
  0x6d   : > { %1052 = vst [vmem:[%s4575_s7 + $0x560] sm:$0xff] %v1051_v44  ;;  %1054 = vst [vmem:[%s4575_s7 + $0x568] sm:$0xff] %v1053_v45  ;;  %v1055_v46 = vld [vmem:[%s4570_s6 + $0xae0] sm:$0xff]  ;;  %v1057_v47 = vld [vmem:[%s4570_s6 + $0xaf0] sm:$0xff] }
  0x6e   : > { %v1059_v48 = vld [vmem:[%s4570_s6 + $0xb00] sm:$0xff]  ;;  %1056 = vst [vmem:[%s4575_s7 + $0x570] sm:$0xff] %v1055_v46  ;;  %1058 = vst [vmem:[%s4575_s7 + $0x578] sm:$0xff] %v1057_v47  ;;  %v1061_v49 = vld [vmem:[%s4570_s6 + $0xb10] sm:$0xff] }
  0x6f   : > { %1060 = vst [vmem:[%s4575_s7 + $0x580] sm:$0xff] %v1059_v48  ;;  %v1063_v50 = vld [vmem:[%s4570_s6 + $0xb20] sm:$0xff]  ;;  %v1065_v51 = vld [vmem:[%s4570_s6 + $0xb30] sm:$0xff]  ;;  %1062 = vst [vmem:[%s4575_s7 + $0x588] sm:$0xff] %v1061_v49 }
  0x70   : > { %1064 = vst [vmem:[%s4575_s7 + $0x590] sm:$0xff] %v1063_v50  ;;  %1066 = vst [vmem:[%s4575_s7 + $0x598] sm:$0xff] %v1065_v51  ;;  %v1067_v52 = vld [vmem:[%s4570_s6 + $0xb40] sm:$0xff]  ;;  %v1069_v53 = vld [vmem:[%s4570_s6 + $0xb50] sm:$0xff] }
  0x71   : > { %v1071_v54 = vld [vmem:[%s4570_s6 + $0xb60] sm:$0xff]  ;;  %1068 = vst [vmem:[%s4575_s7 + $0x5a0] sm:$0xff] %v1067_v52  ;;  %1070 = vst [vmem:[%s4575_s7 + $0x5a8] sm:$0xff] %v1069_v53  ;;  %v1073_v55 = vld [vmem:[%s4570_s6 + $0xb70] sm:$0xff] }
  0x72   : > { %1072 = vst [vmem:[%s4575_s7 + $0x5b0] sm:$0xff] %v1071_v54  ;;  %v1075_v56 = vld [vmem:[%s4570_s6 + $0xb80] sm:$0xff]  ;;  %v1077_v57 = vld [vmem:[%s4570_s6 + $0xb90] sm:$0xff]  ;;  %1074 = vst [vmem:[%s4575_s7 + $0x5b8] sm:$0xff] %v1073_v55 }
  0x73   : > { %1076 = vst [vmem:[%s4575_s7 + $0x5c0] sm:$0xff] %v1075_v56  ;;  %1078 = vst [vmem:[%s4575_s7 + $0x5c8] sm:$0xff] %v1077_v57  ;;  %v1079_v58 = vld [vmem:[%s4570_s6 + $0xba0] sm:$0xff]  ;;  %v1081_v59 = vld [vmem:[%s4570_s6 + $0xbb0] sm:$0xff] }
  0x74   : > { %v1083_v60 = vld [vmem:[%s4570_s6 + $0xbc0] sm:$0xff]  ;;  %1080 = vst [vmem:[%s4575_s7 + $0x5d0] sm:$0xff] %v1079_v58  ;;  %1082 = vst [vmem:[%s4575_s7 + $0x5d8] sm:$0xff] %v1081_v59  ;;  %v1085_v61 = vld [vmem:[%s4570_s6 + $0xbd0] sm:$0xff] }
  0x75   : > { %1084 = vst [vmem:[%s4575_s7 + $0x5e0] sm:$0xff] %v1083_v60  ;;  %v1087_v62 = vld [vmem:[%s4570_s6 + $0xbe0] sm:$0xff]  ;;  %v1089_v63 = vld [vmem:[%s4570_s6 + $0xbf0] sm:$0xff]  ;;  %1086 = vst [vmem:[%s4575_s7 + $0x5e8] sm:$0xff] %v1085_v61 }
  0x76   : > { %1088 = vst [vmem:[%s4575_s7 + $0x5f0] sm:$0xff] %v1087_v62  ;;  %1090 = vst [vmem:[%s4575_s7 + $0x5f8] sm:$0xff] %v1089_v63  ;;  %v1091_v0 = vld [vmem:[%s4570_s6 + $0xc00] sm:$0xff]  ;;  %v1093_v1 = vld [vmem:[%s4570_s6 + $0xc10] sm:$0xff] }
  0x77   : > { %v1095_v2 = vld [vmem:[%s4570_s6 + $0xc20] sm:$0xff]  ;;  %1092 = vst [vmem:[%s4575_s7 + $0x600] sm:$0xff] %v1091_v0  ;;  %1094 = vst [vmem:[%s4575_s7 + $0x608] sm:$0xff] %v1093_v1  ;;  %v1097_v3 = vld [vmem:[%s4570_s6 + $0xc30] sm:$0xff] }
  0x78   : > { %1096 = vst [vmem:[%s4575_s7 + $0x610] sm:$0xff] %v1095_v2  ;;  %v1099_v4 = vld [vmem:[%s4570_s6 + $0xc40] sm:$0xff]  ;;  %v1101_v5 = vld [vmem:[%s4570_s6 + $0xc50] sm:$0xff]  ;;  %1098 = vst [vmem:[%s4575_s7 + $0x618] sm:$0xff] %v1097_v3 }
  0x79   : > { %1100 = vst [vmem:[%s4575_s7 + $0x620] sm:$0xff] %v1099_v4  ;;  %1102 = vst [vmem:[%s4575_s7 + $0x628] sm:$0xff] %v1101_v5  ;;  %v1103_v6 = vld [vmem:[%s4570_s6 + $0xc60] sm:$0xff]  ;;  %v1105_v7 = vld [vmem:[%s4570_s6 + $0xc70] sm:$0xff] }
  0x7a   : > { %v1107_v8 = vld [vmem:[%s4570_s6 + $0xc80] sm:$0xff]  ;;  %1104 = vst [vmem:[%s4575_s7 + $0x630] sm:$0xff] %v1103_v6  ;;  %1106 = vst [vmem:[%s4575_s7 + $0x638] sm:$0xff] %v1105_v7  ;;  %v1109_v9 = vld [vmem:[%s4570_s6 + $0xc90] sm:$0xff] }
  0x7b   : > { %1108 = vst [vmem:[%s4575_s7 + $0x640] sm:$0xff] %v1107_v8  ;;  %v1111_v10 = vld [vmem:[%s4570_s6 + $0xca0] sm:$0xff]  ;;  %v1113_v11 = vld [vmem:[%s4570_s6 + $0xcb0] sm:$0xff]  ;;  %1110 = vst [vmem:[%s4575_s7 + $0x648] sm:$0xff] %v1109_v9 }
  0x7c   : > { %1112 = vst [vmem:[%s4575_s7 + $0x650] sm:$0xff] %v1111_v10  ;;  %1114 = vst [vmem:[%s4575_s7 + $0x658] sm:$0xff] %v1113_v11  ;;  %v1115_v12 = vld [vmem:[%s4570_s6 + $0xcc0] sm:$0xff]  ;;  %v1117_v13 = vld [vmem:[%s4570_s6 + $0xcd0] sm:$0xff] }
  0x7d   : > { %v1119_v14 = vld [vmem:[%s4570_s6 + $0xce0] sm:$0xff]  ;;  %1116 = vst [vmem:[%s4575_s7 + $0x660] sm:$0xff] %v1115_v12  ;;  %1118 = vst [vmem:[%s4575_s7 + $0x668] sm:$0xff] %v1117_v13  ;;  %v1121_v15 = vld [vmem:[%s4570_s6 + $0xcf0] sm:$0xff] }
  0x7e   : > { %1120 = vst [vmem:[%s4575_s7 + $0x670] sm:$0xff] %v1119_v14  ;;  %v1123_v16 = vld [vmem:[%s4570_s6 + $0xd00] sm:$0xff]  ;;  %v1125_v17 = vld [vmem:[%s4570_s6 + $0xd10] sm:$0xff]  ;;  %1122 = vst [vmem:[%s4575_s7 + $0x678] sm:$0xff] %v1121_v15 }
  0x7f   : > { %1124 = vst [vmem:[%s4575_s7 + $0x680] sm:$0xff] %v1123_v16  ;;  %1126 = vst [vmem:[%s4575_s7 + $0x688] sm:$0xff] %v1125_v17  ;;  %v1127_v18 = vld [vmem:[%s4570_s6 + $0xd20] sm:$0xff]  ;;  %v1129_v19 = vld [vmem:[%s4570_s6 + $0xd30] sm:$0xff] }
  0x80   : > { %v1131_v20 = vld [vmem:[%s4570_s6 + $0xd40] sm:$0xff]  ;;  %1128 = vst [vmem:[%s4575_s7 + $0x690] sm:$0xff] %v1127_v18  ;;  %1130 = vst [vmem:[%s4575_s7 + $0x698] sm:$0xff] %v1129_v19  ;;  %v1133_v21 = vld [vmem:[%s4570_s6 + $0xd50] sm:$0xff] }
  0x81   : > { %1132 = vst [vmem:[%s4575_s7 + $0x6a0] sm:$0xff] %v1131_v20  ;;  %v1135_v22 = vld [vmem:[%s4570_s6 + $0xd60] sm:$0xff]  ;;  %v1137_v23 = vld [vmem:[%s4570_s6 + $0xd70] sm:$0xff]  ;;  %1134 = vst [vmem:[%s4575_s7 + $0x6a8] sm:$0xff] %v1133_v21 }
  0x82   : > { %1136 = vst [vmem:[%s4575_s7 + $0x6b0] sm:$0xff] %v1135_v22  ;;  %1138 = vst [vmem:[%s4575_s7 + $0x6b8] sm:$0xff] %v1137_v23  ;;  %v1139_v24 = vld [vmem:[%s4570_s6 + $0xd80] sm:$0xff]  ;;  %v1141_v25 = vld [vmem:[%s4570_s6 + $0xd90] sm:$0xff] }
  0x83   : > { %v1143_v26 = vld [vmem:[%s4570_s6 + $0xda0] sm:$0xff]  ;;  %1140 = vst [vmem:[%s4575_s7 + $0x6c0] sm:$0xff] %v1139_v24  ;;  %1142 = vst [vmem:[%s4575_s7 + $0x6c8] sm:$0xff] %v1141_v25  ;;  %v1145_v27 = vld [vmem:[%s4570_s6 + $0xdb0] sm:$0xff] }
  0x84   : > { %1144 = vst [vmem:[%s4575_s7 + $0x6d0] sm:$0xff] %v1143_v26  ;;  %v1147_v28 = vld [vmem:[%s4570_s6 + $0xdc0] sm:$0xff]  ;;  %v1149_v29 = vld [vmem:[%s4570_s6 + $0xdd0] sm:$0xff]  ;;  %1146 = vst [vmem:[%s4575_s7 + $0x6d8] sm:$0xff] %v1145_v27 }
  0x85   : > { %1148 = vst [vmem:[%s4575_s7 + $0x6e0] sm:$0xff] %v1147_v28  ;;  %1150 = vst [vmem:[%s4575_s7 + $0x6e8] sm:$0xff] %v1149_v29  ;;  %v1151_v30 = vld [vmem:[%s4570_s6 + $0xde0] sm:$0xff]  ;;  %v1153_v31 = vld [vmem:[%s4570_s6 + $0xdf0] sm:$0xff] }
  0x86   : > { %v1155_v32 = vld [vmem:[%s4570_s6 + $0xe00] sm:$0xff]  ;;  %1152 = vst [vmem:[%s4575_s7 + $0x6f0] sm:$0xff] %v1151_v30  ;;  %1154 = vst [vmem:[%s4575_s7 + $0x6f8] sm:$0xff] %v1153_v31  ;;  %v1157_v33 = vld [vmem:[%s4570_s6 + $0xe10] sm:$0xff] }
  0x87   : > { %1156 = vst [vmem:[%s4575_s7 + $0x700] sm:$0xff] %v1155_v32  ;;  %v1159_v34 = vld [vmem:[%s4570_s6 + $0xe20] sm:$0xff]  ;;  %v1161_v35 = vld [vmem:[%s4570_s6 + $0xe30] sm:$0xff]  ;;  %1158 = vst [vmem:[%s4575_s7 + $0x708] sm:$0xff] %v1157_v33 }
  0x88   : > { %1160 = vst [vmem:[%s4575_s7 + $0x710] sm:$0xff] %v1159_v34  ;;  %1162 = vst [vmem:[%s4575_s7 + $0x718] sm:$0xff] %v1161_v35  ;;  %v1163_v36 = vld [vmem:[%s4570_s6 + $0xe40] sm:$0xff]  ;;  %v1165_v37 = vld [vmem:[%s4570_s6 + $0xe50] sm:$0xff] }
  0x89   : > { %v1167_v38 = vld [vmem:[%s4570_s6 + $0xe60] sm:$0xff]  ;;  %1164 = vst [vmem:[%s4575_s7 + $0x720] sm:$0xff] %v1163_v36  ;;  %1166 = vst [vmem:[%s4575_s7 + $0x728] sm:$0xff] %v1165_v37  ;;  %v1169_v39 = vld [vmem:[%s4570_s6 + $0xe70] sm:$0xff] }
  0x8a   : > { %1168 = vst [vmem:[%s4575_s7 + $0x730] sm:$0xff] %v1167_v38  ;;  %v1171_v40 = vld [vmem:[%s4570_s6 + $0xe80] sm:$0xff]  ;;  %v1173_v41 = vld [vmem:[%s4570_s6 + $0xe90] sm:$0xff]  ;;  %1170 = vst [vmem:[%s4575_s7 + $0x738] sm:$0xff] %v1169_v39 }
  0x8b   : > { %1172 = vst [vmem:[%s4575_s7 + $0x740] sm:$0xff] %v1171_v40  ;;  %1174 = vst [vmem:[%s4575_s7 + $0x748] sm:$0xff] %v1173_v41  ;;  %v1175_v42 = vld [vmem:[%s4570_s6 + $0xea0] sm:$0xff]  ;;  %v1177_v43 = vld [vmem:[%s4570_s6 + $0xeb0] sm:$0xff] }
  0x8c   : > { %v1179_v44 = vld [vmem:[%s4570_s6 + $0xec0] sm:$0xff]  ;;  %1176 = vst [vmem:[%s4575_s7 + $0x750] sm:$0xff] %v1175_v42  ;;  %1178 = vst [vmem:[%s4575_s7 + $0x758] sm:$0xff] %v1177_v43  ;;  %v1181_v45 = vld [vmem:[%s4570_s6 + $0xed0] sm:$0xff] }
  0x8d   : > { %1180 = vst [vmem:[%s4575_s7 + $0x760] sm:$0xff] %v1179_v44  ;;  %v1183_v46 = vld [vmem:[%s4570_s6 + $0xee0] sm:$0xff]  ;;  %v1185_v47 = vld [vmem:[%s4570_s6 + $0xef0] sm:$0xff]  ;;  %1182 = vst [vmem:[%s4575_s7 + $0x768] sm:$0xff] %v1181_v45 }
  0x8e   : > { %1184 = vst [vmem:[%s4575_s7 + $0x770] sm:$0xff] %v1183_v46  ;;  %1186 = vst [vmem:[%s4575_s7 + $0x778] sm:$0xff] %v1185_v47  ;;  %v1187_v48 = vld [vmem:[%s4570_s6 + $0xf00] sm:$0xff]  ;;  %v1189_v49 = vld [vmem:[%s4570_s6 + $0xf10] sm:$0xff] }
  0x8f   : > { %v1191_v50 = vld [vmem:[%s4570_s6 + $0xf20] sm:$0xff]  ;;  %1188 = vst [vmem:[%s4575_s7 + $0x780] sm:$0xff] %v1187_v48  ;;  %1190 = vst [vmem:[%s4575_s7 + $0x788] sm:$0xff] %v1189_v49  ;;  %v1193_v51 = vld [vmem:[%s4570_s6 + $0xf30] sm:$0xff] }
  0x90   : > { %1192 = vst [vmem:[%s4575_s7 + $0x790] sm:$0xff] %v1191_v50  ;;  %v1195_v52 = vld [vmem:[%s4570_s6 + $0xf40] sm:$0xff]  ;;  %v1197_v53 = vld [vmem:[%s4570_s6 + $0xf50] sm:$0xff]  ;;  %1194 = vst [vmem:[%s4575_s7 + $0x798] sm:$0xff] %v1193_v51 }
  0x91   : > { %1196 = vst [vmem:[%s4575_s7 + $0x7a0] sm:$0xff] %v1195_v52  ;;  %1198 = vst [vmem:[%s4575_s7 + $0x7a8] sm:$0xff] %v1197_v53  ;;  %v1199_v54 = vld [vmem:[%s4570_s6 + $0xf60] sm:$0xff]  ;;  %v1201_v55 = vld [vmem:[%s4570_s6 + $0xf70] sm:$0xff] }
  0x92   : > { %v1203_v56 = vld [vmem:[%s4570_s6 + $0xf80] sm:$0xff]  ;;  %1200 = vst [vmem:[%s4575_s7 + $0x7b0] sm:$0xff] %v1199_v54  ;;  %1202 = vst [vmem:[%s4575_s7 + $0x7b8] sm:$0xff] %v1201_v55  ;;  %v1205_v57 = vld [vmem:[%s4570_s6 + $0xf90] sm:$0xff] }
  0x93   : > { %1204 = vst [vmem:[%s4575_s7 + $0x7c0] sm:$0xff] %v1203_v56  ;;  %v1207_v58 = vld [vmem:[%s4570_s6 + $0xfa0] sm:$0xff]  ;;  %v1209_v59 = vld [vmem:[%s4570_s6 + $0xfb0] sm:$0xff]  ;;  %1206 = vst [vmem:[%s4575_s7 + $0x7c8] sm:$0xff] %v1205_v57 }
  0x94   : > { %1208 = vst [vmem:[%s4575_s7 + $0x7d0] sm:$0xff] %v1207_v58  ;;  %1210 = vst [vmem:[%s4575_s7 + $0x7d8] sm:$0xff] %v1209_v59  ;;  %v1211_v60 = vld [vmem:[%s4570_s6 + $0xfc0] sm:$0xff]  ;;  %v1213_v61 = vld [vmem:[%s4570_s6 + $0xfd0] sm:$0xff] }
  0x95   : > { %v1215_v62 = vld [vmem:[%s4570_s6 + $0xfe0] sm:$0xff]  ;;  %1212 = vst [vmem:[%s4575_s7 + $0x7e0] sm:$0xff] %v1211_v60  ;;  %1214 = vst [vmem:[%s4575_s7 + $0x7e8] sm:$0xff] %v1213_v61  ;;  %v1217_v63 = vld [vmem:[%s4570_s6 + $0xff0] sm:$0xff] }
  0x96   : > { %1216 = vst [vmem:[%s4575_s7 + $0x7f0] sm:$0xff] %v1215_v62  ;;  %1218 = vst [vmem:[%s4575_s7 + $0x7f8] sm:$0xff] %v1217_v63 }
  0x97 PF: > { %p3707_p10 = scmp.ge.s32.totalorder %s4487_s18, 1  ;;  %p1239_p11 = scmp.lt.s32.totalorder %s4487_s18, 3 }
  0x99   : > { %p1240_p12 = pnand %p3707_p10, %p1239_p11 }
  0x9a   : > { %s5089_s8 = sand.u32 (!%p1240_p12), 1, %s4479_s16   ;;  %v1292_v0 = vld [vmem:[%s5518_s0 + $0x8] sm:$0xff] (!%p1240_p12)  ;;  %vm1900_vm0 = vcmask (!%p1240_p12), 1041409   ;;  %v1291_v63 = vld [vmem:[%s5518_s0] sm:$0xff] (!%p1240_p12)  ;;  %s3710_s14 = sshll.u32 (!%p1240_p12), %s4536_s19, 1 }
  0x9b   : > { %1243 = sbr.rel (%p1240_p12) target bundleno = 654 (0x28e), region = 70  ;;  %v1308_v1 = vld [vmem:[%s5518_s0 + $0x88] sm:$0xff] (!%p1240_p12)  ;;  %s3708_s20 = sshll.u32 (!%p1240_p12), %s5089_s8, 11  ;;  %v1329_v3 = vrot.slane (!%p1240_p12), %v1292_v0, 4 }
  0x9c   : > { %v1300_v2 = vld [vmem:[%s5518_s0 + $0x48] sm:$0xff] (!%p1240_p12)  ;;  %v1425_v4 = vrot.slane (!%p1240_p12), %v1308_v1, 4  ;;  %s5104_s27 = scalar_lea.vmem (!%p1240_p12), [#allocation2], %s3708_s20  ;;  %p1281_p13 = scmp.lt.s32.totalorder (!%p1240_p12), %s3710_s14, 3 }
  0x9d   : > { %v1316_v5 = vld [vmem:[%s5518_s0 + $0xc8] sm:$0xff] (!%p1240_p12)  ;;  %v1377_v6 = vrot.slane (!%p1240_p12), %v1300_v2, 4  ;;  %v1330_v9 = vadd.f32 (!%p1240_p12), %v1329_v3, %v1292_v0  ;;  %v4047_v17 = vld [vmem:[%s5104_s27 + $0x14] ss:$8 sps:$4 sm:$0xff] (!%p1240_p12)   ;;  %v4051_v21 = vld [vmem:[%s5104_s27 + $0x10] ss:$8 sps:$4 sm:$0xff] (!%p1240_p12)  }
  0x9e   : > { %v1473_v7 = vrot.slane (!%p1240_p12), %v1316_v5, 4  ;;  %v4041_v8 = vld [vmem:[%s5104_s27 + $0x4] ss:$8 sps:$4 sm:$0xff] (!%p1240_p12)   ;;  %v1426_v10 = vadd.f32 (!%p1240_p12), %v1425_v4, %v1308_v1  ;;  %v4045_v14 = vld [vmem:[%s5104_s27] ss:$8 sps:$4 sm:$0xff] (!%p1240_p12)   ;;  %s3709_s30 = sshll.u32 (!%p1240_p12), %s5089_s8, 2 }
  0x9f   : > { %v1378_v11 = vadd.f32 (!%p1240_p12), %v1377_v6, %v1300_v2  ;;  %v4043_v12 = vld [vmem:[%s5104_s27 + $0x404] ss:$8 sps:$4 sm:$0xff] (!%p1240_p12)   ;;  %3229 = vmatprep.subr.bf16.mxu1 (!%p1240_p12), %v4041_v8  ;;  %v4046_v15 = vld [vmem:[%s5104_s27 + $0x400] ss:$8 sps:$4 sm:$0xff] (!%p1240_p12)   ;;  %v1331_v16 = vrot.slane (!%p1240_p12), %v1330_v9, 2  ;;  %s3975_s5 = sshll.u32 (!%p1240_p12), %s4536_s19, 6 }
  0xa0   : > { %v1474_v13 = vadd.f32 (!%p1240_p12), %v1473_v7, %v1316_v5  ;;  %3393 = vmatprep.subr.bf16.mxu0 (!%p1240_p12), %v4043_v12  ;;  %v1427_v18 = vrot.slane (!%p1240_p12), %v1426_v10, 2  ;;  %3230 = vmatpush1.bf16.msra.mxu1 (!%p1240_p12), %v4045_v14  ;;  %v4049_v20 = vld [vmem:[%s5104_s27 + $0x414] ss:$8 sps:$4 sm:$0xff] (!%p1240_p12)   ;;  %v4052_v24 = vld [vmem:[%s5104_s27 + $0x410] ss:$8 sps:$4 sm:$0xff] (!%p1240_p12)   ;;  %v1307_v0 = vld [vmem:[%s5518_s0 + $0x80] sm:$0xff] (!%p1240_p12)  ;;  %s5474_s11 = scalar_lea.hbm (!%p1240_p12), %s5522_s4, %s3975_s5 }
  0xa1   : > { %v1379_v19 = vrot.slane (!%p1240_p12), %v1378_v11, 2  ;;  %3394 = vmatpush1.bf16.msra.mxu0 (!%p1240_p12), %v4046_v15  ;;  %v1332_v22 = vadd.f32 (!%p1240_p12), %v1331_v16, %v1330_v9  ;;  %3231 = vmatprep.subr.bf16.mxu1 (!%p1240_p12), %v4047_v17  ;;  %v4053_v27 = vld [vmem:[%s5104_s27 + $0x24] ss:$8 sps:$4 sm:$0xff] (!%p1240_p12)   ;;  %v4057_v31 = vld [vmem:[%s5104_s27 + $0x20] ss:$8 sps:$4 sm:$0xff] (!%p1240_p12)   ;;  %s1278_s6 = scalar_lea.vmem (!%p1240_p12), [#allocation3], %s3709_s30 }
  0xa2   : > { %v1475_v23 = vrot.slane %v1474_v13, 2  ;;  %v1428_v25 = vadd.f32 %v1427_v18, %v1426_v10  ;;  %3395 = vmatprep.subr.bf16.mxu0 %v4049_v20  ;;  %v4055_v30 = vld [vmem:[%s5104_s27 + $0x424] ss:$8 sps:$4 sm:$0xff]   ;;  %v4058_v32 = vld [vmem:[%s5104_s27 + $0x420] ss:$8 sps:$4 sm:$0xff]   ;;  %v1323_v10 = vrot.slane %v1291_v63, 4 }
  0xa3   : > { %v1380_v26 = vadd.f32 %v1379_v19, %v1378_v11  ;;  %v1333_v28 = vrot.slane %v1332_v22, 1  ;;  %v4059_v33 = vld [vmem:[%s5104_s27 + $0x34] ss:$8 sps:$4 sm:$0xff]   ;;  %v4063_v42 = vld [vmem:[%s5104_s27 + $0x30] ss:$8 sps:$4 sm:$0xff]   ;;  %v1299_v4 = vld [vmem:[%s5518_s0 + $0x40] sm:$0xff] }
  0xa4   : > { %v1476_v29 = vadd.f32 %v1475_v23, %v1474_v13  ;;  %3232 = vmatpush1.bf16.msra.mxu1 %v4051_v21  ;;  %v1429_v35 = vrot.slane %v1428_v25, 1  ;;  %v4061_v37 = vld [vmem:[%s5104_s27 + $0x434] ss:$8 sps:$4 sm:$0xff]   ;;  %v4064_v44 = vld [vmem:[%s5104_s27 + $0x430] ss:$8 sps:$4 sm:$0xff]   ;;  %v1315_v5 = vld [vmem:[%s5518_s0 + $0xc0] sm:$0xff]  ;;  %v1324_v18 = vadd.f32 %v1323_v10, %v1291_v63 }
  0xa5   : > { %3396 = vmatpush1.bf16.msra.mxu0 %v4052_v24  ;;  %v1334_v34 = vadd.f32 %v1333_v28, %v1332_v22  ;;  %v1381_v36 = vrot.slane %v1380_v26, 1  ;;  %3233 = vmatprep.subr.bf16.mxu1 %v4053_v27  ;;  %v4065_v45 = vld [vmem:[%s5104_s27 + $0x44] ss:$8 sps:$4 sm:$0xff]   ;;  %v4069_v53 = vld [vmem:[%s5104_s27 + $0x40] ss:$8 sps:$4 sm:$0xff]   ;;  %v1419_v13 = vrot.slane %v1307_v0, 4 }
  0xa6   : > { %3397 = vmatprep.subr.bf16.mxu0 %v4055_v30  ;;  %v1477_v38 = vrot.slane %v1476_v29, 1  ;;  %v1430_v39 = vadd.f32 %v1429_v35, %v1428_v25  ;;  %v4067_v48 = vld [vmem:[%s5104_s27 + $0x444] ss:$8 sps:$4 sm:$0xff]   ;;  %v4070_v54 = vld [vmem:[%s5104_s27 + $0x440] ss:$8 sps:$4 sm:$0xff]   ;;  %v1371_v15 = vrot.slane %v1299_v4, 4 }
  0xa7   : > { %v1517_v40 = vmul.f32 0.125, %v1334_v34  ;;  %v1382_v41 = vadd.f32 %v1381_v36, %v1380_v26  ;;  %v4071_v57 = vld [vmem:[%s5104_s27 + $0x54] ss:$8 sps:$4 sm:$0xff]   ;;  %v4075_v1 = vld [vmem:[%s5104_s27 + $0x50] ss:$8 sps:$4 sm:$0xff]   ;;  %v1467_v16 = vrot.slane %v1315_v5, 4  ;;  %v1420_v20 = vadd.f32 %v1419_v13, %v1307_v0 }
  0xa8   : > { %v1478_v43 = vadd.f32 %v1477_v38, %v1476_v29  ;;  %3234 = vmatpush1.bf16.msra.mxu1 %v4057_v31  ;;  %v1533_v46 = vmul.f32 0.125, %v1430_v39  ;;  %v4073_v59 = vld [vmem:[%s5104_s27 + $0x454] ss:$8 sps:$4 sm:$0xff]   ;;  %v4076_v6 = vld [vmem:[%s5104_s27 + $0x450] ss:$8 sps:$4 sm:$0xff]   ;;  %v1372_v23 = vadd.f32 %v1371_v15, %v1299_v4  ;;  %v1325_v26 = vrot.slane %v1324_v18, 2 }
  0xa9   : > { %3398 = vmatpush1.bf16.msra.mxu0 %v4058_v32  ;;  %v1549_v47 = vpack.c.bf16 %v1517_v40, %v1517_v40  ;;  %3235 = vmatprep.subr.bf16.mxu1 %v4059_v33  ;;  %v1525_v49 = vmul.f32 0.125, %v1382_v41  ;;  %v4077_v7 = vld [vmem:[%s5104_s27 + $0x64] ss:$8 sps:$4 sm:$0xff]   ;;  %v4081_v11 = vld [vmem:[%s5104_s27 + $0x60] ss:$8 sps:$4 sm:$0xff]   ;;  %v1468_v24 = vadd.f32 %v1467_v16, %v1315_v5  ;;  %v1421_v29 = vrot.slane %v1420_v20, 2 }
  0xaa   : > { %3399 = vmatprep.subr.bf16.mxu0 %v4061_v37  ;;  %v1541_v50 = vmul.f32 0.125, %v1478_v43  ;;  %v1565_v51 = vpack.c.bf16 %v1533_v46, %v1533_v46  ;;  %v4079_v9 = vld [vmem:[%s5104_s27 + $0x464] ss:$8 sps:$4 sm:$0xff]   ;;  %v4082_v12 = vld [vmem:[%s5104_s27 + $0x460] ss:$8 sps:$4 sm:$0xff]   ;;  %v1373_v31 = vrot.slane %v1372_v23, 2  ;;  %v1326_v34 = vadd.f32 %v1325_v26, %v1324_v18 }
  0xab   : > { %v1869_v52 = vunpack.c.l.b16 %v1549_v47  ;;  %v1557_v55 = vpack.c.bf16 %v1525_v49, %v1525_v49  ;;  %v4083_v14 = vld [vmem:[%s5104_s27 + $0x74] ss:$8 sps:$4 sm:$0xff]   ;;  %v4087_v19 = vld [vmem:[%s5104_s27 + $0x70] ss:$8 sps:$4 sm:$0xff]   ;;  %v4089_v22 = vld [vmem:[%s5104_s27 + $0x84] ss:$8 sps:$4 sm:$0xff]   ;;  %v1422_v36 = vadd.f32 %v1421_v29, %v1420_v20 }
  0xac   : > { %v1573_v56 = vpack.c.bf16 %v1541_v50, %v1541_v50  ;;  %3236 = vmatpush1.bf16.msra.mxu1 %v4063_v42  ;;  %v1885_v58 = vunpack.c.l.b16 %v1565_v51  ;;  %v4085_v17 = vld [vmem:[%s5104_s27 + $0x474] ss:$8 sps:$4 sm:$0xff]   ;;  %v4088_v21 = vld [vmem:[%s5104_s27 + $0x470] ss:$8 sps:$4 sm:$0xff]   ;;  %v4091_v25 = vld [vmem:[%s5104_s27 + $0x484] ss:$8 sps:$4 sm:$0xff]   ;;  %v1374_v39 = vadd.f32 %v1373_v31, %v1372_v23 }
  0xad   : > { %3400 = vmatpush1.bf16.msra.mxu0 %v4064_v44  ;;  %3237 = vmatprep.subr.bf16.mxu1 %v4065_v45  ;;  %v1877_v60 = vunpack.c.l.b16 %v1557_v55  ;;  %v4093_v27 = vld [vmem:[%s5104_s27 + $0x80] ss:$8 sps:$4 sm:$0xff]   ;;  %v4095_v30 = vld [vmem:[%s5104_s27 + $0x94] ss:$8 sps:$4 sm:$0xff]   ;;  %v1469_v32 = vrot.slane %v1468_v24, 2  ;;  %v1327_v42 = vrot.slane %v1326_v34, 1 }
  0xae   : > { %3401 = vmatprep.subr.bf16.mxu0 %v4067_v48  ;;  %v1893_v61 = vunpack.c.l.b16 %v1573_v56  ;;  %v1902_v62 = vsel %vm1900_vm0, %v1885_v58, %v1869_v52  ;;  %v4094_v28 = vld [vmem:[%s5104_s27 + $0x480] ss:$8 sps:$4 sm:$0xff]   ;;  %v4097_v33 = vld [vmem:[%s5104_s27 + $0x494] ss:$8 sps:$4 sm:$0xff]   ;;  %v4099_v35 = vld [vmem:[%s5104_s27 + $0x90] ss:$8 sps:$4 sm:$0xff]  }
  0xaf   : > { %v1918_v2 = vpack.c.b16 %v1902_v62, %v1902_v62  ;;  %v4100_v37 = vld [vmem:[%s5104_s27 + $0x490] ss:$8 sps:$4 sm:$0xff]   ;;  %v4101_v38 = vld [vmem:[%s5104_s27 + $0xa4] ss:$8 sps:$4 sm:$0xff]   ;;  %v1470_v40 = vadd.f32 %v1469_v32, %v1468_v24  ;;  %v4105_v43 = vld [vmem:[%s5104_s27 + $0xa0] ss:$8 sps:$4 sm:$0xff]   ;;  %v1328_v50 = vadd.f32 %v1327_v42, %v1326_v34 }
  0xb0   : > { %v1910_v3 = vsel %vm1900_vm0, %v1893_v61, %v1877_v60  ;;  %3238 = vmatpush1.bf16.msra.mxu1 %v4069_v53  ;;  %v4103_v41 = vld [vmem:[%s5104_s27 + $0x4a4] ss:$8 sps:$4 sm:$0xff]   ;;  %v4106_v44 = vld [vmem:[%s5104_s27 + $0x4a0] ss:$8 sps:$4 sm:$0xff]   ;;  %v1423_v45 = vrot.slane %v1422_v36, 1  ;;  %v1375_v47 = vrot.slane %v1374_v39, 1 }
  0xb1   : > { %3402 = vmatpush1.bf16.msra.mxu0 %v4070_v54  ;;  %v1926_v8 = vpack.c.b16 %v1910_v3, %v1910_v3  ;;  %3239 = vmatprep.subr.bf16.mxu1 %v4071_v57  ;;  %v4107_v46 = vld [vmem:[%s5104_s27 + $0xb4] ss:$8 sps:$4 sm:$0xff]   ;;  %v1471_v48 = vrot.slane %v1470_v40, 1  ;;  %v4111_v51 = vld [vmem:[%s5104_s27 + $0xb0] ss:$8 sps:$4 sm:$0xff]   ;;  %v1516_v58 = vmul.f32 0.125, %v1328_v50 }
  0xb2   : > { %3403 = vmatprep.subr.bf16.mxu0 %v4073_v59  ;;  %3261 = vmatprep.mubr.bf16.mxu1 %v1918_v2  ;;  %v4109_v49 = vld [vmem:[%s5104_s27 + $0x4b4] ss:$8 sps:$4 sm:$0xff]   ;;  %v4112_v52 = vld [vmem:[%s5104_s27 + $0x4b0] ss:$8 sps:$4 sm:$0xff]   ;;  %v1424_v53 = vadd.f32 %v1423_v45, %v1422_v36  ;;  %v4113_v54 = vld [vmem:[%s5104_s27 + $0xc4] ss:$8 sps:$4 sm:$0xff]   ;;  %v1376_v55 = vadd.f32 %v1375_v47, %v1374_v39 }
  0xb3   : > { %3425 = vmatprep.mubr.bf16.mxu0 %v1926_v8  ;;  %v1472_v56 = vadd.f32 %v1471_v48, %v1470_v40  ;;  %v4115_v57 = vld [vmem:[%s5104_s27 + $0x4c4] ss:$8 sps:$4 sm:$0xff]   ;;  %v4117_v59 = vld [vmem:[%s5104_s27 + $0xc0] ss:$8 sps:$4 sm:$0xff]   ;;  %v4119_v62 = vld [vmem:[%s5104_s27 + $0xd4] ss:$8 sps:$4 sm:$0xff]   ;;  %v1548_v4 = vpack.c.bf16 %v1516_v58, %v1516_v58 }
  0xb4   : > { %3240 = vmatpush1.bf16.msra.mxu1 %v4075_v1  ;;  %v4118_v60 = vld [vmem:[%s5104_s27 + $0x4c0] ss:$8 sps:$4 sm:$0xff]   ;;  %v1532_v61 = vmul.f32 0.125, %v1424_v53  ;;  %v1524_v63 = vmul.f32 0.125, %v1376_v55  ;;  %v4121_v1 = vld [vmem:[%s5104_s27 + $0x4d4] ss:$8 sps:$4 sm:$0xff]  }
  0xb5   : > { %3404 = vmatpush1.bf16.msra.mxu0 %v4076_v6  ;;  %3241 = vmatprep.subr.bf16.mxu1 %v4077_v7  ;;  %v1540_v0 = vmul.f32 0.125, %v1472_v56  ;;  %v4123_v2 = vld [vmem:[%s5104_s27 + $0xd0] ss:$8 sps:$4 sm:$0xff]   ;;  %v4125_v5 = vld [vmem:[%s5104_s27 + $0xe4] ss:$8 sps:$4 sm:$0xff]   ;;  %v1868_v13 = vunpack.c.l.b16 %v1548_v4  ;;  %s5530_s14 = smov (!%p1281_p13, %s3710_s14), 3 }
  0xb6   : > { %3405 = vmatprep.subr.bf16.mxu0 %v4079_v9  ;;  %v4124_v3 = vld [vmem:[%s5104_s27 + $0x4d0] ss:$8 sps:$4 sm:$0xff]   ;;  %v1564_v6 = vpack.c.bf16 %v1532_v61, %v1532_v61  ;;  %v1556_v7 = vpack.c.bf16 %v1524_v63, %v1524_v63  ;;  %v4127_v9 = vld [vmem:[%s5104_s27 + $0x4e4] ss:$8 sps:$4 sm:$0xff]   ;;  %v4129_v10 = vld [vmem:[%s5104_s27 + $0xe0] ss:$8 sps:$4 sm:$0xff]   ;;  %s1288_s29 = scalar_lea.vmem %s5521_s3, %s5530_s14 }
  0xb7   : > { %v1572_v8 = vpack.c.bf16 %v1540_v0, %v1540_v0  ;;  %v4135_v18 = vld [vmem:[%s5104_s27 + $0xf0] ss:$8 sps:$4 sm:$0xff]   ;;  %v4139_v20 = vld [vmem:[%s5104_s27 + $0x104] ss:$8 sps:$4 sm:$0xff]   ;;  %v4137_v24 = vld [vmem:[%s5104_s27 + $0x100] ss:$8 sps:$4 sm:$0xff]  }
  0xb8   : > { %3242 = vmatpush1.bf16.msra.mxu1 %v4081_v11  ;;  %v4130_v11 = vld [vmem:[%s5104_s27 + $0x4e0] ss:$8 sps:$4 sm:$0xff]   ;;  %v1876_v15 = vunpack.c.l.b16 %v1556_v7  ;;  %v4142_v23 = vld [vmem:[%s5104_s27 + $0x504] ss:$8 sps:$4 sm:$0xff]   ;;  %v4148_v29 = vld [vmem:[%s5104_s27 + $0x514] ss:$8 sps:$4 sm:$0xff]  }
  0xb9   : > { %3406 = vmatpush1.bf16.msra.mxu0 %v4082_v12  ;;  %3243 = vmatprep.subr.bf16.mxu1 %v4083_v14  ;;  %v4131_v12 = vld [vmem:[%s5104_s27 + $0xf4] ss:$8 sps:$4 sm:$0xff]   ;;  %v1884_v14 = vunpack.c.l.b16 %v1564_v6  ;;  %v1892_v16 = vunpack.c.l.b16 %v1572_v8  ;;  %v4146_v31 = vld [vmem:[%s5104_s27 + $0x510] ss:$8 sps:$4 sm:$0xff]   ;;  %v4151_v32 = vld [vmem:[%s5104_s27 + $0x124] ss:$8 sps:$4 sm:$0xff]  }
  0xba   : > { %3407 = vmatprep.subr.bf16.mxu0 %v4085_v17  ;;  %v4133_v17 = vld [vmem:[%s5104_s27 + $0x4f4] ss:$8 sps:$4 sm:$0xff]   ;;  %v4149_v34 = vld [vmem:[%s5104_s27 + $0x120] ss:$8 sps:$4 sm:$0xff]   ;;  %v4158_v39 = vld [vmem:[%s5104_s27 + $0x530] ss:$8 sps:$4 sm:$0xff]  }
  0xbb   : > { %v4157_v36 = vld [vmem:[%s5104_s27 + $0x134] ss:$8 sps:$4 sm:$0xff]   ;;  %v4163_v40 = vld [vmem:[%s5104_s27 + $0x144] ss:$8 sps:$4 sm:$0xff]   ;;  %v4161_v42 = vld [vmem:[%s5104_s27 + $0x140] ss:$8 sps:$4 sm:$0xff]  }
  0xbc   : > { %3244 = vmatpush1.bf16.msra.mxu1 %v4087_v19  ;;  %v4136_v19 = vld [vmem:[%s5104_s27 + $0x4f0] ss:$8 sps:$4 sm:$0xff]   ;;  %v4172_v45 = vld [vmem:[%s5104_s27 + $0x554] ss:$8 sps:$4 sm:$0xff]   ;;  %v4175_v48 = vld [vmem:[%s5104_s27 + $0x164] ss:$8 sps:$4 sm:$0xff]  }
  0xbd   : > { %3408 = vmatpush1.bf16.msra.mxu0 %v4088_v21  ;;  %3245 = vmatprep.subr.bf16.mxu1 %v4089_v22  ;;  %v1901_v21 = vsel %vm1900_vm0, %v1884_v14, %v1868_v13  ;;  %v1909_v22 = vsel %vm1900_vm0, %v1892_v16, %v1876_v15  ;;  %v4170_v47 = vld [vmem:[%s5104_s27 + $0x550] ss:$8 sps:$4 sm:$0xff]   ;;  %v4176_v55 = vld [vmem:[%s5104_s27 + $0x560] ss:$8 sps:$4 sm:$0xff]   ;;  %v4181_v58 = vld [vmem:[%s5104_s27 + $0x174] ss:$8 sps:$4 sm:$0xff]  }
  0xbe   : > { %3409 = vmatprep.subr.bf16.mxu0 %v4091_v25  ;;  %v4140_v25 = vld [vmem:[%s5104_s27 + $0x500] ss:$8 sps:$4 sm:$0xff]   ;;  %v1917_v26 = vpack.c.b16 %v1901_v21, %v1901_v21  ;;  %v1294_v50 = vld [vmem:[%s5518_s0 + $0x18] sm:$0xff]  ;;  %v1293_v0 = vld [vmem:[%s5518_s0 + $0x10] sm:$0xff]  ;;  %s3618_s7 = sshll.u32 %s1278_s6, 4  ;;  %s3604_s12 = scalar_lea.sflag [#allocation4], %s5089_s8  ;;  %s5476_s7 = int_to_ptr.vmem [resolvable:$true] %s3618_s7 }
  0xbf   : > { %v1341_v53 = vrot.slane %v1294_v50, 4  ;;  %v1302_v56 = vld [vmem:[%s5518_s0 + $0x58] sm:$0xff]  ;;  %v1301_v6 = vld [vmem:[%s5518_s0 + $0x50] sm:$0xff]  ;;  %v1335_v8 = vrot.slane %v1293_v0, 4  ;;  %s4425_s13 = scalar_lea.vmem %s5476_s7, 64  ;;  %s4489_s19 = smov [#allocation3]  }
  0xc0   : > { %3246 = vmatpush1.bf16.msra.mxu1 %v4093_v27  ;;  %v1925_v27 = vpack.c.b16 %v1909_v22, %v1909_v22  ;;  %v1389_v61 = vrot.slane %v1302_v56, 4  ;;  %v4184_v63 = vld [vmem:[%s5104_s27 + $0x574] ss:$8 sps:$4 sm:$0xff]   ;;  %v4182_v13 = vld [vmem:[%s5104_s27 + $0x570] ss:$8 sps:$4 sm:$0xff]   ;;  %p4426_p0 = scmp.ne.s32.totalorder %s5476_s7, %s4425_s13 }
  0xc1   : > { %3410 = vmatpush1.bf16.msra.mxu0 %v4094_v28  ;;  %3247 = vmatprep.subr.bf16.mxu1 %v4095_v30  ;;  %v4145_v28 = vld [vmem:[%s5104_s27 + $0x114] ss:$8 sps:$4 sm:$0xff]   ;;  %v4143_v30 = vld [vmem:[%s5104_s27 + $0x110] ss:$8 sps:$4 sm:$0xff]  }
  0xc2   : > { %3411 = vmatprep.subr.bf16.mxu0 %v4097_v33  ;;  %v4154_v33 = vld [vmem:[%s5104_s27 + $0x524] ss:$8 sps:$4 sm:$0xff]   ;;  %v1390_v4 = vadd.f32 %v1389_v61, %v1302_v56  ;;  %v1317_v7 = vld [vmem:[%s5518_s0 + $0xd0] sm:$0xff]  ;;  %p4427_p1 = pnand %p4426_p0, %p4554_p6 }
  0xc4   : > { %3248 = vmatpush1.bf16.msra.mxu1 %v4099_v35  ;;  %v4152_v35 = vld [vmem:[%s5104_s27 + $0x520] ss:$8 sps:$4 sm:$0xff]   ;;  %v1391_v16 = vrot.slane %v1390_v4, 2  ;;  %p4428_p2 = pneg %p4427_p1 }
  0xc5   : > { %3412 = vmatpush1.bf16.msra.mxu0 %v4100_v37  ;;  %3249 = vmatprep.subr.bf16.mxu1 %v4101_v38  ;;  %v4160_v37 = vld [vmem:[%s5104_s27 + $0x534] ss:$8 sps:$4 sm:$0xff]   ;;  %v4155_v38 = vld [vmem:[%s5104_s27 + $0x130] ss:$8 sps:$4 sm:$0xff]  }
  0xc6   : > { %3413 = vmatprep.subr.bf16.mxu0 %v4103_v41  ;;  %v4166_v41 = vld [vmem:[%s5104_s27 + $0x544] ss:$8 sps:$4 sm:$0xff]  }
  0xc8   : > { %3250 = vmatpush1.bf16.msra.mxu1 %v4105_v43  ;;  %v4164_v43 = vld [vmem:[%s5104_s27 + $0x540] ss:$8 sps:$4 sm:$0xff]  }
  0xc9   : > { %3414 = vmatpush1.bf16.msra.mxu0 %v4106_v44  ;;  %3251 = vmatprep.subr.bf16.mxu1 %v4107_v46  ;;  %v4169_v44 = vld [vmem:[%s5104_s27 + $0x154] ss:$8 sps:$4 sm:$0xff]   ;;  %v4167_v46 = vld [vmem:[%s5104_s27 + $0x150] ss:$8 sps:$4 sm:$0xff]  }
  0xca   : > { %3415 = vmatprep.subr.bf16.mxu0 %v4109_v49  ;;  %v4178_v49 = vld [vmem:[%s5104_s27 + $0x564] ss:$8 sps:$4 sm:$0xff]  }
  0xcc   : > { %3252 = vmatpush1.bf16.msra.mxu1 %v4111_v51  ;;  %v1310_v51 = vld [vmem:[%s5518_s0 + $0x98] sm:$0xff] }
  0xcd   : > { %3416 = vmatpush1.bf16.msra.mxu0 %v4112_v52  ;;  %3253 = vmatprep.subr.bf16.mxu1 %v4113_v54  ;;  %v4173_v52 = vld [vmem:[%s5104_s27 + $0x160] ss:$8 sps:$4 sm:$0xff]   ;;  %v1437_v54 = vrot.slane %v1310_v51, 4 }
  0xce   : > { %3417 = vmatprep.subr.bf16.mxu0 %v4115_v57  ;;  %v1318_v57 = vld [vmem:[%s5518_s0 + $0xd8] sm:$0xff] }
  0xd0   : > { %3254 = vmatpush1.bf16.msra.mxu1 %v4117_v59  ;;  %v1342_v59 = vadd.f32 %v1341_v53, %v1294_v50 }
  0xd1   : > { %3418 = vmatpush1.bf16.msra.mxu0 %v4118_v60  ;;  %3255 = vmatprep.subr.bf16.mxu1 %v4119_v62  ;;  %v1438_v60 = vadd.f32 %v1437_v54, %v1310_v51  ;;  %v1485_v62 = vrot.slane %v1318_v57, 4  ;;  %v4199_v54 = vld [vmem:[%s5104_s27 + $0x1a4] ss:$8 sps:$4 sm:$0xff]  }
  0xd2   : > { %3419 = vmatprep.subr.bf16.mxu0 %v4121_v1  ;;  %v1309_v1 = vld [vmem:[%s5518_s0 + $0x90] sm:$0xff] }
  0xd4   : > { %3256 = vmatpush1.bf16.msra.mxu1 %v4123_v2  ;;  %v1343_v2 = vrot.slane %v1342_v59, 2 }
  0xd5   : > { %3420 = vmatpush1.bf16.msra.mxu0 %v4124_v3  ;;  %3257 = vmatprep.subr.bf16.mxu1 %v4125_v5  ;;  %v1439_v3 = vrot.slane %v1438_v60, 2  ;;  %v1486_v5 = vadd.f32 %v1485_v62, %v1318_v57 }
  0xd6   : > { %3421 = vmatprep.subr.bf16.mxu0 %v4127_v9  ;;  %v1431_v9 = vrot.slane %v1309_v1, 4  ;;  %v1344_v14 = vadd.f32 %v1343_v2, %v1342_v59 }
  0xd7   : > { %v1440_v15 = vadd.f32 %v1439_v3, %v1438_v60  ;;  %v4197_v60 = vld [vmem:[%s5104_s27 + $0x1a0] ss:$8 sps:$4 sm:$0xff]  }
  0xd8   : > { %3258 = vmatpush1.bf16.msra.mxu1 %v4129_v10  ;;  %v1383_v10 = vrot.slane %v1301_v6, 4  ;;  %v1432_v21 = vadd.f32 %v1431_v9, %v1309_v1  ;;  %v4203_v9 = vld [vmem:[%s5104_s27 + $0x1b0] ss:$8 sps:$4 sm:$0xff]  }
  0xd9   : > { %3422 = vmatpush1.bf16.msra.mxu0 %v4130_v11  ;;  %3259 = vmatprep.subr.bf16.mxu1 %v4131_v12  ;;  %v1479_v11 = vrot.slane %v1317_v7, 4  ;;  %v4179_v12 = vld [vmem:[%s5104_s27 + $0x170] ss:$8 sps:$4 sm:$0xff]  }
  0xda   : > { %3423 = vmatprep.subr.bf16.mxu0 %v4133_v17  ;;  %v1487_v17 = vrot.slane %v1486_v5, 2  ;;  %v1384_v22 = vadd.f32 %v1383_v10, %v1301_v6  ;;  %v4208_v6 = vld [vmem:[%s5104_s27 + $0x5b4] ss:$8 sps:$4 sm:$0xff]  }
  0xdc   : > { %3260 = vmatpush1.bf16.msra.mxu1 %v4135_v18  ;;  %v4187_v18 = vld [vmem:[%s5104_s27 + $0x184] ss:$8 sps:$4 sm:$0xff]  }
  0xdd   : > { %3424 = vmatpush1.bf16.msra.mxu0 %v4136_v19  ;;  %3270 = vmatprep.subr.bf16.mxu1 %v4139_v20  ;;  %v4190_v19 = vld [vmem:[%s5104_s27 + $0x584] ss:$8 sps:$4 sm:$0xff]   ;;  %v1336_v20 = vadd.f32 %v1335_v8, %v1293_v0  ;;  %v4200_v0 = vld [vmem:[%s5104_s27 + $0x5a0] ss:$8 sps:$4 sm:$0xff]  }
  0xde   : > { %3434 = vmatprep.subr.bf16.mxu0 %v4142_v23  ;;  %v1345_v23 = vrot.slane %v1344_v14, 1 }
  0xdf   : > { %3262 = vmatmul.mubr.bf16.vlgmr.msra.gmra.mrb[0].mxu1 %v1917_v26  ;;  %v1488_v26 = vadd.f32 %v1487_v17, %v1486_v5  ;;  %v4205_v5 = vld [vmem:[%s5104_s27 + $0x1b4] ss:$8 sps:$4 sm:$0xff]   ;;  %v4214_v17 = vld [vmem:[%s5104_s27 + $0x5c4] ss:$8 sps:$4 sm:$0xff]  }
  0xe0   : > { %3426 = vmatmul.mubr.bf16.vlgmr.msra.gmra.mrb[0].mxu0 %v1925_v27  ;;  %3271 = vmatpush1.bf16.msra.mxu1 %v4137_v24  ;;  %v1441_v24 = vrot.slane %v1440_v15, 1  ;;  %v4185_v27 = vld [vmem:[%s5104_s27 + $0x180] ss:$8 sps:$4 sm:$0xff]  }
  0xe1   : > { %3435 = vmatpush1.bf16.msra.mxu0 %v4140_v25  ;;  %3272 = vmatprep.subr.bf16.mxu1 %v4145_v28  ;;  %v1392_v25 = vadd.f32 %v1391_v16, %v1390_v4  ;;  %v1337_v28 = vrot.slane %v1336_v20, 2  ;;  %v4211_v16 = vld [vmem:[%s5104_s27 + $0x1c4] ss:$8 sps:$4 sm:$0xff]  }
  0xe2   : > { %3436 = vmatprep.subr.bf16.mxu0 %v4148_v29  ;;  %v1433_v29 = vrot.slane %v1432_v21, 2 }
  0xe4   : > { %3273 = vmatpush1.bf16.msra.mxu1 %v4143_v30  ;;  %v1385_v30 = vrot.slane %v1384_v22, 2 }
  0xe5   : > { %3437 = vmatpush1.bf16.msra.mxu0 %v4146_v31  ;;  %3274 = vmatprep.subr.bf16.mxu1 %v4151_v32  ;;  %v1480_v31 = vadd.f32 %v1479_v11, %v1317_v7  ;;  %v4188_v32 = vld [vmem:[%s5104_s27 + $0x580] ss:$8 sps:$4 sm:$0xff]  }
  0xe6   : > { %3438 = vmatprep.subr.bf16.mxu0 %v4154_v33  ;;  %v1346_v33 = vadd.f32 %v1345_v23, %v1344_v14 }
  0xe8   : > { %3275 = vmatpush1.bf16.msra.mxu1 %v4149_v34  ;;  %v1442_v34 = vadd.f32 %v1441_v24, %v1440_v15  ;;  %v4217_v24 = vld [vmem:[%s5104_s27 + $0x1d4] ss:$8 sps:$4 sm:$0xff]  }
  0xe9   : > { %3439 = vmatpush1.bf16.msra.mxu0 %v4152_v35  ;;  %3276 = vmatprep.subr.bf16.mxu1 %v4157_v36  ;;  %v1393_v35 = vrot.slane %v1392_v25, 1  ;;  %v1489_v36 = vrot.slane %v1488_v26, 1 }
  0xea   : > { %3440 = vmatprep.subr.bf16.mxu0 %v4160_v37  ;;  %v4193_v37 = vld [vmem:[%s5104_s27 + $0x194] ss:$8 sps:$4 sm:$0xff]  }
  0xec   : > { %3277 = vmatpush1.bf16.msra.mxu1 %v4155_v38  ;;  %v4196_v38 = vld [vmem:[%s5104_s27 + $0x594] ss:$8 sps:$4 sm:$0xff]  }
  0xed   : > { %3441 = vmatpush1.bf16.msra.mxu0 %v4158_v39  ;;  %3278 = vmatprep.subr.bf16.mxu1 %v4163_v40  ;;  %v1481_v39 = vrot.slane %v1480_v31, 2  ;;  %v1519_v40 = vmul.f32 0.125, %v1346_v33  ;;  %v4226_v33 = vld [vmem:[%s5104_s27 + $0x5e4] ss:$8 sps:$4 sm:$0xff]  }
  0xee   : > { %3442 = vmatprep.subr.bf16.mxu0 %v4166_v41  ;;  %v1535_v41 = vmul.f32 0.125, %v1442_v34  ;;  %v4221_v34 = vld [vmem:[%s5104_s27 + $0x1e0] ss:$8 sps:$4 sm:$0xff]  }
  0xef   : > { %v1551_v50 = vpack.c.bf16 %v1519_v40, %v1519_v40  ;;  %v4229_v40 = vld [vmem:[%s5104_s27 + $0x1f4] ss:$8 sps:$4 sm:$0xff]  }
  0xf0   : > { %3279 = vmatpush1.bf16.msra.mxu1 %v4161_v42  ;;  %v1394_v42 = vadd.f32 %v1393_v35, %v1392_v25  ;;  %v1567_v51 = vpack.c.bf16 %v1535_v41, %v1535_v41  ;;  %v4220_v25 = vld [vmem:[%s5104_s27 + $0x5d4] ss:$8 sps:$4 sm:$0xff]   ;;  %v4224_v35 = vld [vmem:[%s5104_s27 + $0x5e0] ss:$8 sps:$4 sm:$0xff]  }
  0xf1   : > { %3443 = vmatpush1.bf16.msra.mxu0 %v4164_v43  ;;  %3280 = vmatprep.subr.bf16.mxu1 %v4169_v44  ;;  %v1490_v43 = vadd.f32 %v1489_v36, %v1488_v26  ;;  %v4191_v44 = vld [vmem:[%s5104_s27 + $0x190] ss:$8 sps:$4 sm:$0xff]   ;;  %v1871_v56 = vunpack.c.l.b16 %v1551_v50  ;;  %v4232_v41 = vld [vmem:[%s5104_s27 + $0x5f4] ss:$8 sps:$4 sm:$0xff]  }
  0xf2   : > { %3444 = vmatprep.subr.bf16.mxu0 %v4172_v45  ;;  %v1338_v45 = vadd.f32 %v1337_v28, %v1336_v20  ;;  %v1887_v57 = vunpack.c.l.b16 %v1567_v51  ;;  %v4215_v26 = vld [vmem:[%s5104_s27 + $0x1d0] ss:$8 sps:$4 sm:$0xff]   ;;  %v4236_v51 = vld [vmem:[%s5104_s27 + $0x600] ss:$8 sps:$4 sm:$0xff]  }
  0xf3   : > { %v1543_v53 = vmul.f32 0.125, %v1490_v43  ;;  %v4218_v28 = vld [vmem:[%s5104_s27 + $0x5d0] ss:$8 sps:$4 sm:$0xff]  }
  0xf4   : > { %3281 = vmatpush1.bf16.msra.mxu1 %v4167_v46  ;;  %v1434_v46 = vadd.f32 %v1433_v29, %v1432_v21  ;;  %v1339_v61 = vrot.slane %v1338_v45, 1  ;;  %v1904_v1 = vsel %vm1900_vm0, %v1887_v57, %v1871_v56  ;;  %v4230_v43 = vld [vmem:[%s5104_s27 + $0x5f0] ss:$8 sps:$4 sm:$0xff]   ;;  %v4247_v56 = vld [vmem:[%s5104_s27 + $0x224] ss:$8 sps:$4 sm:$0xff]  }
  0xf5   : > { %3445 = vmatpush1.bf16.msra.mxu0 %v4170_v47  ;;  %3282 = vmatprep.subr.bf16.mxu1 %v4175_v48  ;;  %v1386_v47 = vadd.f32 %v1385_v30, %v1384_v22  ;;  %v1482_v48 = vadd.f32 %v1481_v39, %v1480_v31  ;;  %v1575_v59 = vpack.c.bf16 %v1543_v53, %v1543_v53  ;;  %v4244_v53 = vld [vmem:[%s5104_s27 + $0x614] ss:$8 sps:$4 sm:$0xff]   ;;  %v1296_v57 = vld [vmem:[%s5518_s0 + $0x28] sm:$0xff] }
  0xf6   : > { %3446 = vmatprep.subr.bf16.mxu0 %v4178_v49  ;;  %v4194_v49 = vld [vmem:[%s5104_s27 + $0x590] ss:$8 sps:$4 sm:$0xff]   ;;  %v1435_v62 = vrot.slane %v1434_v46, 1  ;;  %v1920_v7 = vpack.c.b16 %v1904_v1, %v1904_v1  ;;  %v1340_v11 = vadd.f32 %v1339_v61, %v1338_v45 }
  0xf7   : > { %v1895_v3 = vunpack.c.l.b16 %v1575_v59  ;;  %v1483_v4 = vrot.slane %v1482_v48, 1  ;;  %v4250_v59 = vld [vmem:[%s5104_s27 + $0x624] ss:$8 sps:$4 sm:$0xff]  }
  0xf8   : > { %3283 = vmatpush1.bf16.msra.mxu1 %v4173_v52  ;;  %v1527_v52 = vmul.f32 0.125, %v1394_v42  ;;  %3302 = vmatprep.mubr.bf16.mxu1 %v1920_v7  ;;  %v1518_v20 = vmul.f32 0.125, %v1340_v11  ;;  %v4227_v42 = vld [vmem:[%s5104_s27 + $0x1f0] ss:$8 sps:$4 sm:$0xff]   ;;  %v4256_v7 = vld [vmem:[%s5104_s27 + $0x634] ss:$8 sps:$4 sm:$0xff]  }
  0xf9   : > { %3447 = vmatpush1.bf16.msra.mxu0 %v4176_v55  ;;  %3284 = vmatprep.subr.bf16.mxu1 %v4181_v58  ;;  %v4202_v55 = vld [vmem:[%s5104_s27 + $0x5a4] ss:$8 sps:$4 sm:$0xff]   ;;  %v1484_v15 = vadd.f32 %v1483_v4, %v1482_v48  ;;  %v4233_v48 = vld [vmem:[%s5104_s27 + $0x200] ss:$8 sps:$4 sm:$0xff]  }
  0xfa   : > { %3448 = vmatprep.subr.bf16.mxu0 %v4184_v63  ;;  %v1559_v58 = vpack.c.bf16 %v1527_v52, %v1527_v52  ;;  %v1387_v63 = vrot.slane %v1386_v47, 1  ;;  %v4241_v52 = vld [vmem:[%s5104_s27 + $0x214] ss:$8 sps:$4 sm:$0xff]   ;;  %v4245_v4 = vld [vmem:[%s5104_s27 + $0x220] ss:$8 sps:$4 sm:$0xff]  }
  0xfb   : > { %v1542_v23 = vmul.f32 0.125, %v1484_v15 }
  0xfc   : > { %3285 = vmatpush1.bf16.msra.mxu1 %v4179_v12  ;;  %v1879_v2 = vunpack.c.l.b16 %v1559_v58  ;;  %v4206_v12 = vld [vmem:[%s5104_s27 + $0x5b0] ss:$8 sps:$4 sm:$0xff]   ;;  %v1388_v14 = vadd.f32 %v1387_v63, %v1386_v47  ;;  %v4238_v47 = vld [vmem:[%s5104_s27 + $0x604] ss:$8 sps:$4 sm:$0xff]  }
  0xfd   : > { %3449 = vmatpush1.bf16.msra.mxu0 %v4182_v13  ;;  %3286 = vmatprep.subr.bf16.mxu1 %v4187_v18  ;;  %v1436_v13 = vadd.f32 %v1435_v62, %v1434_v46  ;;  %v4209_v18 = vld [vmem:[%s5104_s27 + $0x1c0] ss:$8 sps:$4 sm:$0xff]   ;;  %v1574_v31 = vpack.c.bf16 %v1542_v23, %v1542_v23  ;;  %v4235_v46 = vld [vmem:[%s5104_s27 + $0x204] ss:$8 sps:$4 sm:$0xff]  }
  0xfe   : > { %3450 = vmatprep.subr.bf16.mxu0 %v4190_v19  ;;  %v1912_v8 = vsel %vm1900_vm0, %v1895_v3, %v1879_v2  ;;  %v4212_v19 = vld [vmem:[%s5104_s27 + $0x5c0] ss:$8 sps:$4 sm:$0xff]   ;;  %v1526_v22 = vmul.f32 0.125, %v1388_v14 }
  0xff   : > { %v1928_v10 = vpack.c.b16 %v1912_v8, %v1912_v8  ;;  %v1534_v21 = vmul.f32 0.125, %v1436_v13  ;;  %v1894_v39 = vunpack.c.l.b16 %v1574_v31  ;;  %v1312_v58 = vld [vmem:[%s5518_s0 + $0xa8] sm:$0xff]  ;;  %v4268_v31 = vld [vmem:[%s5104_s27 + $0x654] ss:$8 sps:$4 sm:$0xff]  }
 0x100   : > { %3287 = vmatpush1.bf16.msra.mxu1 %v4185_v27  ;;  %v1550_v27 = vpack.c.bf16 %v1518_v20, %v1518_v20  ;;  %v1558_v30 = vpack.c.bf16 %v1526_v22, %v1526_v22  ;;  %v1449_v61 = vrot.slane %v1312_v58, 4  ;;  %v1304_v62 = vld [vmem:[%s5518_s0 + $0x68] sm:$0xff] }
 0x101   : > { %3451 = vmatpush1.bf16.msra.mxu0 %v4188_v32  ;;  %3288 = vmatprep.subr.bf16.mxu1 %v4193_v37  ;;  %v1566_v29 = vpack.c.bf16 %v1534_v21, %v1534_v21  ;;  %v4223_v32 = vld [vmem:[%s5104_s27 + $0x1e4] ss:$8 sps:$4 sm:$0xff]   ;;  %v1401_v2 = vrot.slane %v1304_v62, 4 }
 0x102   : > { %3452 = vmatprep.subr.bf16.mxu0 %v4196_v38  ;;  %3466 = vmatprep.mubr.bf16.mxu0 %v1928_v10  ;;  %v1870_v36 = vunpack.c.l.b16 %v1550_v27  ;;  %v1878_v38 = vunpack.c.l.b16 %v1558_v30  ;;  %v1320_v63 = vld [vmem:[%s5518_s0 + $0xe8] sm:$0xff]  ;;  %v1450_v1 = vadd.f32 %v1449_v61, %v1312_v58  ;;  %v4265_v30 = vld [vmem:[%s5104_s27 + $0x254] ss:$8 sps:$4 sm:$0xff]  }
 0x103   : > { %v1886_v37 = vunpack.c.l.b16 %v1566_v29  ;;  %v1497_v3 = vrot.slane %v1320_v63, 4  ;;  %v1402_v10 = vadd.f32 %v1401_v2, %v1304_v62  ;;  %v4260_v29 = vld [vmem:[%s5104_s27 + $0x640] ss:$8 sps:$4 sm:$0xff]   ;;  %v4277_v62 = vld [vmem:[%s5104_s27 + $0x274] ss:$8 sps:$4 sm:$0xff]  }
 0x104   : > { %3289 = vmatpush1.bf16.msra.mxu1 %v4191_v44  ;;  %v1911_v45 = vsel %vm1900_vm0, %v1894_v39, %v1878_v38  ;;  %v4271_v38 = vld [vmem:[%s5104_s27 + $0x264] ss:$8 sps:$4 sm:$0xff]   ;;  %v4272_v58 = vld [vmem:[%s5104_s27 + $0x660] ss:$8 sps:$4 sm:$0xff]  }
 0x105   : > { %3453 = vmatpush1.bf16.msra.mxu0 %v4194_v49  ;;  %3290 = vmatprep.subr.bf16.mxu1 %v4199_v54  ;;  %v1903_v44 = vsel %vm1900_vm0, %v1886_v37, %v1870_v36  ;;  %v1927_v50 = vpack.c.b16 %v1911_v45, %v1911_v45  ;;  %v4239_v54 = vld [vmem:[%s5104_s27 + $0x210] ss:$8 sps:$4 sm:$0xff]   ;;  %v1498_v11 = vadd.f32 %v1497_v3, %v1320_v63  ;;  %v1403_v15 = vrot.slane %v1402_v10, 2  ;;  %v1311_v45 = vld [vmem:[%s5518_s0 + $0xa0] sm:$0xff]  ;;  %v4280_v63 = vld [vmem:[%s5104_s27 + $0x674] ss:$8 sps:$4 sm:$0xff]  }
 0x106   : > { %3454 = vmatprep.subr.bf16.mxu0 %v4202_v55  ;;  %v1919_v49 = vpack.c.b16 %v1903_v44, %v1903_v44  ;;  %v4242_v55 = vld [vmem:[%s5104_s27 + $0x610] ss:$8 sps:$4 sm:$0xff]   ;;  %v4274_v44 = vld [vmem:[%s5104_s27 + $0x664] ss:$8 sps:$4 sm:$0xff]  }
 0x107   : > { %v1404_v22 = vadd.f32 %v1403_v15, %v1402_v10  ;;  %v4263_v36 = vld [vmem:[%s5104_s27 + $0x250] ss:$8 sps:$4 sm:$0xff]   ;;  %v4281_v10 = vld [vmem:[%s5104_s27 + $0x280] ss:$8 sps:$4 sm:$0xff]  }
 0x108   : > { %3291 = vmatpush1.bf16.msra.mxu1 %v4197_v60  ;;  %v1353_v60 = vrot.slane %v1296_v57, 4  ;;  %v4266_v37 = vld [vmem:[%s5104_s27 + $0x650] ss:$8 sps:$4 sm:$0xff]  }
 0x109   : > { %3455 = vmatpush1.bf16.msra.mxu0 %v4200_v0  ;;  %3292 = vmatprep.subr.bf16.mxu1 %v4205_v5  ;;  %v4248_v5 = vld [vmem:[%s5104_s27 + $0x620] ss:$8 sps:$4 sm:$0xff]   ;;  %v1405_v27 = vrot.slane %v1404_v22, 1 }
 0x10a   : > { %3456 = vmatprep.subr.bf16.mxu0 %v4208_v6  ;;  %v1354_v0 = vadd.f32 %v1353_v60, %v1296_v57  ;;  %v4253_v6 = vld [vmem:[%s5104_s27 + $0x234] ss:$8 sps:$4 sm:$0xff]   ;;  %v1443_v57 = vrot.slane %v1311_v45, 4 }
 0x10c   : > { %3293 = vmatpush1.bf16.msra.mxu1 %v4203_v9  ;;  %v1355_v8 = vrot.slane %v1354_v0, 2  ;;  %v1451_v9 = vrot.slane %v1450_v1, 2  ;;  %v1444_v3 = vadd.f32 %v1443_v57, %v1311_v45  ;;  %v4308_v45 = vld [vmem:[%s5104_s27 + $0x6c0] ss:$8 sps:$4 sm:$0xff]  }
 0x10d   : > { %3457 = vmatpush1.bf16.msra.mxu0 %v4206_v12  ;;  %3294 = vmatprep.subr.bf16.mxu1 %v4211_v16  ;;  %v4251_v12 = vld [vmem:[%s5104_s27 + $0x230] ss:$8 sps:$4 sm:$0xff]   ;;  %v1499_v16 = vrot.slane %v1498_v11, 2 }
 0x10e   : > { %3458 = vmatprep.subr.bf16.mxu0 %v4214_v17  ;;  %v1356_v13 = vadd.f32 %v1355_v8, %v1354_v0  ;;  %v1452_v14 = vadd.f32 %v1451_v9, %v1450_v1  ;;  %v4254_v17 = vld [vmem:[%s5104_s27 + $0x630] ss:$8 sps:$4 sm:$0xff]   ;;  %v4283_v8 = vld [vmem:[%s5104_s27 + $0x284] ss:$8 sps:$4 sm:$0xff]  }
 0x10f   : > { %v1500_v23 = vadd.f32 %v1499_v16, %v1498_v11  ;;  %v4286_v9 = vld [vmem:[%s5104_s27 + $0x684] ss:$8 sps:$4 sm:$0xff]   ;;  %v4289_v16 = vld [vmem:[%s5104_s27 + $0x294] ss:$8 sps:$4 sm:$0xff]  }
 0x110   : > { %3295 = vmatpush1.bf16.msra.mxu1 %v4209_v18  ;;  %v4259_v18 = vld [vmem:[%s5104_s27 + $0x244] ss:$8 sps:$4 sm:$0xff]   ;;  %v1357_v20 = vrot.slane %v1356_v13, 1  ;;  %v1453_v21 = vrot.slane %v1452_v14, 1 }
 0x111   : > { %3459 = vmatpush1.bf16.msra.mxu0 %v4212_v19  ;;  %3296 = vmatprep.subr.bf16.mxu1 %v4217_v24  ;;  %v4262_v19 = vld [vmem:[%s5104_s27 + $0x644] ss:$8 sps:$4 sm:$0xff]   ;;  %v4257_v24 = vld [vmem:[%s5104_s27 + $0x240] ss:$8 sps:$4 sm:$0xff]  }
 0x112   : > { %3460 = vmatprep.subr.bf16.mxu0 %v4220_v25  ;;  %v1358_v25 = vadd.f32 %v1357_v20, %v1356_v13  ;;  %v4284_v13 = vld [vmem:[%s5104_s27 + $0x680] ss:$8 sps:$4 sm:$0xff]   ;;  %v4287_v20 = vld [vmem:[%s5104_s27 + $0x290] ss:$8 sps:$4 sm:$0xff]  }
 0x114   : > { %3297 = vmatpush1.bf16.msra.mxu1 %v4215_v26  ;;  %v1454_v26 = vadd.f32 %v1453_v21, %v1452_v14  ;;  %v4290_v21 = vld [vmem:[%s5104_s27 + $0x690] ss:$8 sps:$4 sm:$0xff]  }
 0x115   : > { %3461 = vmatpush1.bf16.msra.mxu0 %v4218_v28  ;;  %3298 = vmatprep.subr.bf16.mxu1 %v4223_v32  ;;  %v1501_v28 = vrot.slane %v1500_v23, 1  ;;  %v1521_v32 = vmul.f32 0.125, %v1358_v25  ;;  %v4298_v25 = vld [vmem:[%s5104_s27 + $0x6a4] ss:$8 sps:$4 sm:$0xff]  }
 0x116   : > { %3462 = vmatprep.subr.bf16.mxu0 %v4226_v33  ;;  %v1537_v33 = vmul.f32 0.125, %v1454_v26  ;;  %v4293_v26 = vld [vmem:[%s5104_s27 + $0x2a0] ss:$8 sps:$4 sm:$0xff]  }
 0x117   : > { %v1553_v39 = vpack.c.bf16 %v1521_v32, %v1521_v32  ;;  %v4301_v32 = vld [vmem:[%s5104_s27 + $0x2b4] ss:$8 sps:$4 sm:$0xff]  }
 0x118   : > { %3299 = vmatpush1.bf16.msra.mxu1 %v4221_v34  ;;  %v1406_v34 = vadd.f32 %v1405_v27, %v1404_v22 }
 0x119   : > { %3463 = vmatpush1.bf16.msra.mxu0 %v4224_v35  ;;  %3300 = vmatprep.subr.bf16.mxu1 %v4229_v40  ;;  %v1502_v35 = vadd.f32 %v1501_v28, %v1500_v23  ;;  %v1569_v40 = vpack.c.bf16 %v1537_v33, %v1537_v33  ;;  %v4304_v33 = vld [vmem:[%s5104_s27 + $0x6b4] ss:$8 sps:$4 sm:$0xff]  }
 0x11a   : > { %3464 = vmatprep.subr.bf16.mxu0 %v4232_v41  ;;  %v1529_v41 = vmul.f32 0.125, %v1406_v34 }
 0x11c   : > { %3301 = vmatpush1.bf16.msra.mxu1 %v4227_v42  ;;  %v1545_v42 = vmul.f32 0.125, %v1502_v35 }
 0x11d   : > { %3465 = vmatpush1.bf16.msra.mxu0 %v4230_v43  ;;  %3311 = vmatprep.subr.bf16.mxu1 %v4235_v46  ;;  %v1295_v43 = vld [vmem:[%s5518_s0 + $0x20] sm:$0xff]  ;;  %v1873_v46 = vunpack.c.l.b16 %v1553_v39 }
 0x11e   : > { %3475 = vmatprep.subr.bf16.mxu0 %v4238_v47  ;;  %v1889_v47 = vunpack.c.l.b16 %v1569_v40  ;;  %v4307_v40 = vld [vmem:[%s5104_s27 + $0x2c4] ss:$8 sps:$4 sm:$0xff]  }
 0x11f   : > { %3303 = vmatmul.mubr.bf16.vlgmr.msra.gmra.mrb[0].mxu1 %v1919_v49  ;;  %v1577_v49 = vpack.c.bf16 %v1545_v42, %v1545_v42  ;;  %v4305_v42 = vld [vmem:[%s5104_s27 + $0x2c0] ss:$8 sps:$4 sm:$0xff]  }
 0x120   : > { %3467 = vmatmul.mubr.bf16.vlgmr.msra.gmra.mrb[0].mxu0 %v1927_v50  ;;  %3312 = vmatpush1.bf16.msra.mxu1 %v4233_v48  ;;  %v1561_v48 = vpack.c.bf16 %v1529_v41, %v1529_v41  ;;  %v1303_v50 = vld [vmem:[%s5518_s0 + $0x60] sm:$0xff] }
 0x121   : > { %3476 = vmatpush1.bf16.msra.mxu0 %v4236_v51  ;;  %3313 = vmatprep.subr.bf16.mxu1 %v4241_v52  ;;  %v1319_v51 = vld [vmem:[%s5518_s0 + $0xe0] sm:$0xff]  ;;  %v1347_v52 = vrot.slane %v1295_v43, 4  ;;  %v1395_v60 = vrot.slane %v1303_v50, 4 }
 0x122   : > { %3477 = vmatprep.subr.bf16.mxu0 %v4244_v53  ;;  %v4269_v53 = vld [vmem:[%s5104_s27 + $0x260] ss:$8 sps:$4 sm:$0xff]   ;;  %v1491_v61 = vrot.slane %v1319_v51, 4  ;;  %v4310_v41 = vld [vmem:[%s5104_s27 + $0x6c4] ss:$8 sps:$4 sm:$0xff]  }
 0x123   : > { %v1348_v2 = vadd.f32 %v1347_v52, %v1295_v43 }
 0x124   : > { %3314 = vmatpush1.bf16.msra.mxu1 %v4239_v54  ;;  %v1906_v54 = vsel %vm1900_vm0, %v1889_v47, %v1873_v46 }
 0x125   : > { %3478 = vmatpush1.bf16.msra.mxu0 %v4242_v55  ;;  %3315 = vmatprep.subr.bf16.mxu1 %v4247_v56  ;;  %v1881_v55 = vunpack.c.l.b16 %v1561_v48  ;;  %v1897_v56 = vunpack.c.l.b16 %v1577_v49  ;;  %v1349_v11 = vrot.slane %v1348_v2, 2  ;;  %v4313_v48 = vld [vmem:[%s5104_s27 + $0x2d4] ss:$8 sps:$4 sm:$0xff]  }
 0x126   : > { %3479 = vmatprep.subr.bf16.mxu0 %v4250_v59  ;;  %v1922_v59 = vpack.c.b16 %v1906_v54, %v1906_v54  ;;  %v4316_v49 = vld [vmem:[%s5104_s27 + $0x6d4] ss:$8 sps:$4 sm:$0xff]  }
 0x127   : > { %v1914_v0 = vsel %vm1900_vm0, %v1897_v56, %v1881_v55  ;;  %v1314_v54 = vld [vmem:[%s5518_s0 + $0xb8] sm:$0xff] }
 0x128   : > { %3316 = vmatpush1.bf16.msra.mxu1 %v4245_v4  ;;  %3343 = vmatprep.mubr.bf16.mxu1 %v1922_v59  ;;  %v1930_v1 = vpack.c.b16 %v1914_v0, %v1914_v0  ;;  %v4275_v4 = vld [vmem:[%s5104_s27 + $0x270] ss:$8 sps:$4 sm:$0xff]   ;;  %v1461_v59 = vrot.slane %v1314_v54, 4 }
 0x129   : > { %3480 = vmatpush1.bf16.msra.mxu0 %v4248_v5  ;;  %3317 = vmatprep.subr.bf16.mxu1 %v4253_v6  ;;  %v4278_v5 = vld [vmem:[%s5104_s27 + $0x670] ss:$8 sps:$4 sm:$0xff]   ;;  %v1396_v6 = vadd.f32 %v1395_v60, %v1303_v50 }
 0x12a   : > { %3481 = vmatprep.subr.bf16.mxu0 %v4256_v7  ;;  %v1492_v7 = vadd.f32 %v1491_v61, %v1319_v51  ;;  %3507 = vmatprep.mubr.bf16.mxu0 %v1930_v1  ;;  %v4311_v50 = vld [vmem:[%s5104_s27 + $0x2d0] ss:$8 sps:$4 sm:$0xff]  }
 0x12b   : > { %v1397_v14 = vrot.slane %v1396_v6, 2  ;;  %v4314_v55 = vld [vmem:[%s5104_s27 + $0x6d0] ss:$8 sps:$4 sm:$0xff]  }
 0x12c   : > { %3318 = vmatpush1.bf16.msra.mxu1 %v4251_v12  ;;  %v1445_v12 = vrot.slane %v1444_v3, 2  ;;  %v1493_v15 = vrot.slane %v1492_v7, 2  ;;  %v1306_v60 = vld [vmem:[%s5518_s0 + $0x78] sm:$0xff] }
 0x12d   : > { %3482 = vmatpush1.bf16.msra.mxu0 %v4254_v17  ;;  %3319 = vmatprep.subr.bf16.mxu1 %v4259_v18  ;;  %v4292_v17 = vld [vmem:[%s5104_s27 + $0x694] ss:$8 sps:$4 sm:$0xff]   ;;  %v1350_v18 = vadd.f32 %v1349_v11, %v1348_v2  ;;  %v1398_v22 = vadd.f32 %v1397_v14, %v1396_v6  ;;  %v1413_v0 = vrot.slane %v1306_v60, 4 }
 0x12e   : > { %3483 = vmatprep.subr.bf16.mxu0 %v4262_v19  ;;  %v1446_v19 = vadd.f32 %v1445_v12, %v1444_v3  ;;  %v1494_v23 = vadd.f32 %v1493_v15, %v1492_v7  ;;  %v1322_v61 = vld [vmem:[%s5518_s0 + $0xf8] sm:$0xff]  ;;  %v1462_v3 = vadd.f32 %v1461_v59, %v1314_v54  ;;  %v4343_v54 = vld [vmem:[%s5104_s27 + $0x324] ss:$8 sps:$4 sm:$0xff]  }
 0x12f   : > { %v1351_v27 = vrot.slane %v1350_v18, 1  ;;  %v1509_v1 = vrot.slane %v1322_v61, 4  ;;  %v1414_v6 = vadd.f32 %v1413_v0, %v1306_v60  ;;  %v4325_v14 = vld [vmem:[%s5104_s27 + $0x2f4] ss:$8 sps:$4 sm:$0xff]  }
 0x130   : > { %3320 = vmatpush1.bf16.msra.mxu1 %v4257_v24  ;;  %v4295_v24 = vld [vmem:[%s5104_s27 + $0x2a4] ss:$8 sps:$4 sm:$0xff]   ;;  %v1447_v28 = vrot.slane %v1446_v19, 1  ;;  %v4328_v15 = vld [vmem:[%s5104_s27 + $0x6f4] ss:$8 sps:$4 sm:$0xff]  }
 0x131   : > { %3484 = vmatpush1.bf16.msra.mxu0 %v4260_v29  ;;  %3321 = vmatprep.subr.bf16.mxu1 %v4265_v30  ;;  %v4296_v29 = vld [vmem:[%s5104_s27 + $0x6a0] ss:$8 sps:$4 sm:$0xff]   ;;  %v1399_v30 = vrot.slane %v1398_v22, 1  ;;  %v1352_v34 = vadd.f32 %v1351_v27, %v1350_v18  ;;  %v1510_v7 = vadd.f32 %v1509_v1, %v1322_v61  ;;  %v4349_v0 = vld [vmem:[%s5104_s27 + $0x334] ss:$8 sps:$4 sm:$0xff]  }
 0x132   : > { %3485 = vmatprep.subr.bf16.mxu0 %v4268_v31  ;;  %v1495_v31 = vrot.slane %v1494_v23, 1  ;;  %v1448_v35 = vadd.f32 %v1447_v28, %v1446_v19  ;;  %v4331_v28 = vld [vmem:[%s5104_s27 + $0x304] ss:$8 sps:$4 sm:$0xff]   ;;  %v4341_v61 = vld [vmem:[%s5104_s27 + $0x320] ss:$8 sps:$4 sm:$0xff]  }
 0x133   : > { %v1520_v43 = vmul.f32 0.125, %v1352_v34  ;;  %v4352_v1 = vld [vmem:[%s5104_s27 + $0x734] ss:$8 sps:$4 sm:$0xff]  }
 0x134   : > { %3322 = vmatpush1.bf16.msra.mxu1 %v4263_v36  ;;  %v4299_v36 = vld [vmem:[%s5104_s27 + $0x2b0] ss:$8 sps:$4 sm:$0xff]   ;;  %v1496_v39 = vadd.f32 %v1495_v31, %v1494_v23 }
 0x135   : > { %3486 = vmatpush1.bf16.msra.mxu0 %v4266_v37  ;;  %3323 = vmatprep.subr.bf16.mxu1 %v4271_v38  ;;  %v4302_v37 = vld [vmem:[%s5104_s27 + $0x6b0] ss:$8 sps:$4 sm:$0xff]   ;;  %v1400_v38 = vadd.f32 %v1399_v30, %v1398_v22  ;;  %v1552_v51 = vpack.c.bf16 %v1520_v43, %v1520_v43  ;;  %v4340_v43 = vld [vmem:[%s5104_s27 + $0x714] ss:$8 sps:$4 sm:$0xff]  }
 0x136   : > { %3487 = vmatprep.subr.bf16.mxu0 %v4274_v44  ;;  %v1536_v44 = vmul.f32 0.125, %v1448_v35  ;;  %v1544_v47 = vmul.f32 0.125, %v1496_v39  ;;  %v4323_v22 = vld [vmem:[%s5104_s27 + $0x2f0] ss:$8 sps:$4 sm:$0xff]   ;;  %v4332_v39 = vld [vmem:[%s5104_s27 + $0x700] ss:$8 sps:$4 sm:$0xff]  }
 0x137   : > { %v1528_v46 = vmul.f32 0.125, %v1400_v38  ;;  %v4326_v23 = vld [vmem:[%s5104_s27 + $0x6f0] ss:$8 sps:$4 sm:$0xff]   ;;  %v4329_v38 = vld [vmem:[%s5104_s27 + $0x300] ss:$8 sps:$4 sm:$0xff]  }
 0x138   : > { %3324 = vmatpush1.bf16.msra.mxu1 %v4269_v53  ;;  %v1568_v52 = vpack.c.bf16 %v1536_v44, %v1536_v44  ;;  %v1298_v53 = vld [vmem:[%s5518_s0 + $0x38] sm:$0xff]  ;;  %v1576_v57 = vpack.c.bf16 %v1544_v47, %v1544_v47 }
 0x139   : > { %3488 = vmatpush1.bf16.msra.mxu0 %v4272_v58  ;;  %3325 = vmatprep.subr.bf16.mxu1 %v4277_v62  ;;  %v1560_v56 = vpack.c.bf16 %v1528_v46, %v1528_v46  ;;  %v1365_v58 = vrot.slane %v1298_v53, 4  ;;  %v4319_v62 = vld [vmem:[%s5104_s27 + $0x2e4] ss:$8 sps:$4 sm:$0xff]  }
 0x13a   : > { %3489 = vmatprep.subr.bf16.mxu0 %v4280_v63  ;;  %v4322_v63 = vld [vmem:[%s5104_s27 + $0x6e4] ss:$8 sps:$4 sm:$0xff]   ;;  %v1896_v11 = vunpack.c.l.b16 %v1576_v57 }
 0x13b   : > { %v1366_v2 = vadd.f32 %v1365_v58, %v1298_v53 }
 0x13c   : > { %3326 = vmatpush1.bf16.msra.mxu1 %v4275_v4  ;;  %v1872_v4 = vunpack.c.l.b16 %v1552_v51  ;;  %v4338_v51 = vld [vmem:[%s5104_s27 + $0x710] ss:$8 sps:$4 sm:$0xff]  }
 0x13d   : > { %3490 = vmatpush1.bf16.msra.mxu0 %v4278_v5  ;;  %3327 = vmatprep.subr.bf16.mxu1 %v4283_v8  ;;  %v1888_v5 = vunpack.c.l.b16 %v1568_v52  ;;  %v4317_v8 = vld [vmem:[%s5104_s27 + $0x2e0] ss:$8 sps:$4 sm:$0xff]   ;;  %v1367_v12 = vrot.slane %v1366_v2, 2 }
 0x13e   : > { %3491 = vmatprep.subr.bf16.mxu0 %v4286_v9  ;;  %v4320_v9 = vld [vmem:[%s5104_s27 + $0x6e0] ss:$8 sps:$4 sm:$0xff]  }
 0x13f   : > { %v1368_v18 = vadd.f32 %v1367_v12, %v1366_v2  ;;  %v4347_v2 = vld [vmem:[%s5104_s27 + $0x330] ss:$8 sps:$4 sm:$0xff]   ;;  %v4367_v12 = vld [vmem:[%s5104_s27 + $0x364] ss:$8 sps:$4 sm:$0xff]  }
 0x140   : > { %3328 = vmatpush1.bf16.msra.mxu1 %v4281_v10  ;;  %v1880_v10 = vunpack.c.l.b16 %v1560_v56 }
 0x141   : > { %3492 = vmatpush1.bf16.msra.mxu0 %v4284_v13  ;;  %3329 = vmatprep.subr.bf16.mxu1 %v4289_v16  ;;  %v1463_v13 = vrot.slane %v1462_v3, 2  ;;  %v1415_v16 = vrot.slane %v1414_v6, 2 }
 0x142   : > { %3493 = vmatprep.subr.bf16.mxu0 %v4292_v17  ;;  %v1511_v17 = vrot.slane %v1510_v7, 2 }
 0x143   : > { %v1464_v19 = vadd.f32 %v1463_v13, %v1462_v3  ;;  %v4350_v3 = vld [vmem:[%s5104_s27 + $0x730] ss:$8 sps:$4 sm:$0xff]   ;;  %v4370_v13 = vld [vmem:[%s5104_s27 + $0x764] ss:$8 sps:$4 sm:$0xff]  }
 0x144   : > { %3330 = vmatpush1.bf16.msra.mxu1 %v4287_v20  ;;  %v1416_v20 = vadd.f32 %v1415_v16, %v1414_v6  ;;  %v4353_v6 = vld [vmem:[%s5104_s27 + $0x340] ss:$8 sps:$4 sm:$0xff]   ;;  %v1305_v16 = vld [vmem:[%s5518_s0 + $0x70] sm:$0xff] }
 0x145   : > { %3494 = vmatpush1.bf16.msra.mxu0 %v4290_v21  ;;  %3331 = vmatprep.subr.bf16.mxu1 %v4295_v24  ;;  %v1512_v21 = vadd.f32 %v1511_v17, %v1510_v7  ;;  %v1905_v24 = vsel %vm1900_vm0, %v1888_v5, %v1872_v4  ;;  %v1465_v27 = vrot.slane %v1464_v19, 1  ;;  %v4355_v4 = vld [vmem:[%s5104_s27 + $0x344] ss:$8 sps:$4 sm:$0xff]   ;;  %v4356_v7 = vld [vmem:[%s5104_s27 + $0x740] ss:$8 sps:$4 sm:$0xff]   ;;  %v1321_v17 = vld [vmem:[%s5518_s0 + $0xf0] sm:$0xff] }
 0x146   : > { %3495 = vmatprep.subr.bf16.mxu0 %v4298_v25  ;;  %v1913_v25 = vsel %vm1900_vm0, %v1896_v11, %v1880_v10  ;;  %v1417_v30 = vrot.slane %v1416_v20, 1  ;;  %v1921_v34 = vpack.c.b16 %v1905_v24, %v1905_v24  ;;  %v4358_v5 = vld [vmem:[%s5104_s27 + $0x744] ss:$8 sps:$4 sm:$0xff]   ;;  %v4359_v10 = vld [vmem:[%s5104_s27 + $0x350] ss:$8 sps:$4 sm:$0xff]  }
 0x147   : > { %v1513_v31 = vrot.slane %v1512_v21, 1  ;;  %v1929_v35 = vpack.c.b16 %v1913_v25, %v1913_v25  ;;  %v4362_v11 = vld [vmem:[%s5104_s27 + $0x750] ss:$8 sps:$4 sm:$0xff]   ;;  %v4373_v24 = vld [vmem:[%s5104_s27 + $0x374] ss:$8 sps:$4 sm:$0xff]  }
 0x148   : > { %3332 = vmatpush1.bf16.msra.mxu1 %v4293_v26  ;;  %v1369_v26 = vrot.slane %v1368_v18, 1  ;;  %v4376_v25 = vld [vmem:[%s5104_s27 + $0x774] ss:$8 sps:$4 sm:$0xff]  }
 0x149   : > { %3496 = vmatpush1.bf16.msra.mxu0 %v4296_v29  ;;  %3333 = vmatprep.subr.bf16.mxu1 %v4301_v32  ;;  %v4334_v29 = vld [vmem:[%s5104_s27 + $0x704] ss:$8 sps:$4 sm:$0xff]  }
 0x14a   : > { %3497 = vmatprep.subr.bf16.mxu0 %v4304_v33  ;;  %v1370_v32 = vadd.f32 %v1369_v26, %v1368_v18  ;;  %v1466_v33 = vadd.f32 %v1465_v27, %v1464_v19  ;;  %v4365_v18 = vld [vmem:[%s5104_s27 + $0x360] ss:$8 sps:$4 sm:$0xff]   ;;  %v4371_v27 = vld [vmem:[%s5104_s27 + $0x370] ss:$8 sps:$4 sm:$0xff]  }
 0x14c   : > { %3334 = vmatpush1.bf16.msra.mxu1 %v4299_v36  ;;  %v1418_v36 = vadd.f32 %v1417_v30, %v1416_v20  ;;  %v4368_v20 = vld [vmem:[%s5104_s27 + $0x760] ss:$8 sps:$4 sm:$0xff]  }
 0x14d   : > { %3498 = vmatpush1.bf16.msra.mxu0 %v4302_v37  ;;  %3335 = vmatprep.subr.bf16.mxu1 %v4307_v40  ;;  %v1514_v37 = vadd.f32 %v1513_v31, %v1512_v21  ;;  %v1523_v40 = vmul.f32 0.125, %v1370_v32  ;;  %v4379_v32 = vld [vmem:[%s5104_s27 + $0x384] ss:$8 sps:$4 sm:$0xff]  }
 0x14e   : > { %3499 = vmatprep.subr.bf16.mxu0 %v4310_v41  ;;  %v1539_v41 = vmul.f32 0.125, %v1466_v33  ;;  %v1531_v44 = vmul.f32 0.125, %v1418_v36  ;;  %v4382_v33 = vld [vmem:[%s5104_s27 + $0x784] ss:$8 sps:$4 sm:$0xff]   ;;  %v4380_v36 = vld [vmem:[%s5104_s27 + $0x780] ss:$8 sps:$4 sm:$0xff]  }
 0x14f   : > { %v1555_v46 = vpack.c.bf16 %v1523_v40, %v1523_v40  ;;  %v4385_v40 = vld [vmem:[%s5104_s27 + $0x394] ss:$8 sps:$4 sm:$0xff]  }
 0x150   : > { %3336 = vmatpush1.bf16.msra.mxu1 %v4305_v42  ;;  %v4337_v42 = vld [vmem:[%s5104_s27 + $0x314] ss:$8 sps:$4 sm:$0xff]   ;;  %v1571_v47 = vpack.c.bf16 %v1539_v41, %v1539_v41 }
 0x151   : > { %3500 = vmatpush1.bf16.msra.mxu0 %v4308_v45  ;;  %3337 = vmatprep.subr.bf16.mxu1 %v4313_v48  ;;  %v1547_v45 = vmul.f32 0.125, %v1514_v37  ;;  %v1563_v48 = vpack.c.bf16 %v1531_v44, %v1531_v44  ;;  %v1875_v52 = vunpack.c.l.b16 %v1555_v46  ;;  %v4388_v41 = vld [vmem:[%s5104_s27 + $0x794] ss:$8 sps:$4 sm:$0xff]   ;;  %v4386_v44 = vld [vmem:[%s5104_s27 + $0x790] ss:$8 sps:$4 sm:$0xff]  }
 0x152   : > { %3501 = vmatprep.subr.bf16.mxu0 %v4316_v49  ;;  %v1891_v53 = vunpack.c.l.b16 %v1571_v47 }
 0x153   : > { %v1579_v49 = vpack.c.bf16 %v1547_v45, %v1547_v45  ;;  %v1883_v56 = vunpack.c.l.b16 %v1563_v48  ;;  %v4391_v48 = vld [vmem:[%s5104_s27 + $0x3a4] ss:$8 sps:$4 sm:$0xff]  }
 0x154   : > { %3338 = vmatpush1.bf16.msra.mxu1 %v4311_v50  ;;  %v4335_v50 = vld [vmem:[%s5104_s27 + $0x310] ss:$8 sps:$4 sm:$0xff]   ;;  %v1908_v58 = vsel %vm1900_vm0, %v1891_v53, %v1875_v52  ;;  %v4392_v52 = vld [vmem:[%s5104_s27 + $0x7a0] ss:$8 sps:$4 sm:$0xff]  }
 0x155   : > { %3502 = vmatpush1.bf16.msra.mxu0 %v4314_v55  ;;  %3339 = vmatprep.subr.bf16.mxu1 %v4319_v62  ;;  %v4346_v55 = vld [vmem:[%s5104_s27 + $0x724] ss:$8 sps:$4 sm:$0xff]   ;;  %v1899_v57 = vunpack.c.l.b16 %v1579_v49  ;;  %v1924_v59 = vpack.c.b16 %v1908_v58, %v1908_v58  ;;  %v4344_v62 = vld [vmem:[%s5104_s27 + $0x720] ss:$8 sps:$4 sm:$0xff]  }
 0x156   : > { %3503 = vmatprep.subr.bf16.mxu0 %v4322_v63  ;;  %v4394_v49 = vld [vmem:[%s5104_s27 + $0x7a4] ss:$8 sps:$4 sm:$0xff]  }
 0x157   : > { %v1916_v60 = vsel %vm1900_vm0, %v1899_v57, %v1883_v56  ;;  %v4397_v56 = vld [vmem:[%s5104_s27 + $0x3b4] ss:$8 sps:$4 sm:$0xff]  }
 0x158   : > { %3340 = vmatpush1.bf16.msra.mxu1 %v4317_v8  ;;  %v1932_v63 = vpack.c.b16 %v1916_v60, %v1916_v60  ;;  %v4361_v8 = vld [vmem:[%s5104_s27 + $0x354] ss:$8 sps:$4 sm:$0xff]   ;;  %v4398_v60 = vld [vmem:[%s5104_s27 + $0x7b0] ss:$8 sps:$4 sm:$0xff]  }
 0x159   : > { %3504 = vmatpush1.bf16.msra.mxu0 %v4320_v9  ;;  %3341 = vmatprep.subr.bf16.mxu1 %v4325_v14  ;;  %v4364_v9 = vld [vmem:[%s5104_s27 + $0x754] ss:$8 sps:$4 sm:$0xff]  }
 0x15a   : > { %3505 = vmatprep.subr.bf16.mxu0 %v4328_v15  ;;  %v1297_v14 = vld [vmem:[%s5518_s0 + $0x30] sm:$0xff] }
 0x15b   : > { %v1313_v15 = vld [vmem:[%s5518_s0 + $0xb0] sm:$0xff]  ;;  %v1359_v19 = vrot.slane %v1297_v14, 4 }
 0x15c   : > { %3342 = vmatpush1.bf16.msra.mxu1 %v4323_v22  ;;  %v1455_v21 = vrot.slane %v1313_v15, 4  ;;  %v1407_v22 = vrot.slane %v1305_v16, 4  ;;  %v4400_v57 = vld [vmem:[%s5104_s27 + $0x7b4] ss:$8 sps:$4 sm:$0xff]  }
 0x15d   : > { %3506 = vmatpush1.bf16.msra.mxu0 %v4326_v23  ;;  %3352 = vmatprep.subr.bf16.mxu1 %v4331_v28  ;;  %v1503_v23 = vrot.slane %v1321_v17, 4  ;;  %v1360_v26 = vadd.f32 %v1359_v19, %v1297_v14  ;;  %v4374_v28 = vld [vmem:[%s5104_s27 + $0x770] ss:$8 sps:$4 sm:$0xff]   ;;  %v4416_v19 = vld [vmem:[%s5104_s27 + $0x7e0] ss:$8 sps:$4 sm:$0xff]  }
 0x15e   : > { %3516 = vmatprep.subr.bf16.mxu0 %v4334_v29  ;;  %v1456_v29 = vadd.f32 %v1455_v21, %v1313_v15  ;;  %v1408_v30 = vadd.f32 %v1407_v22, %v1305_v16  ;;  %v4415_v16 = vld [vmem:[%s5104_s27 + $0x3e4] ss:$8 sps:$4 sm:$0xff]  }
 0x15f   : > { %3344 = vmatmul.mubr.bf16.vlgmr.msra.gmra.mrb[0].mxu1 %v1921_v34  ;;  %v1504_v31 = vadd.f32 %v1503_v23, %v1321_v17  ;;  %v4377_v34 = vld [vmem:[%s5104_s27 + $0x380] ss:$8 sps:$4 sm:$0xff]   ;;  %v4418_v17 = vld [vmem:[%s5104_s27 + $0x7e4] ss:$8 sps:$4 sm:$0xff]  }
 0x160   : > { %3508 = vmatmul.mubr.bf16.vlgmr.msra.gmra.mrb[0].mxu0 %v1929_v35  ;;  %3353 = vmatpush1.bf16.msra.mxu1 %v4329_v38  ;;  %v1361_v35 = vrot.slane %v1360_v26, 2  ;;  %v1457_v37 = vrot.slane %v1456_v29, 2  ;;  %v1409_v38 = vrot.slane %v1408_v30, 2 }
 0x161   : > { %3517 = vmatpush1.bf16.msra.mxu0 %v4332_v39  ;;  %3354 = vmatprep.subr.bf16.mxu1 %v4337_v42  ;;  %v1505_v39 = vrot.slane %v1504_v31, 2 }
 0x162   : > { %3518 = vmatprep.subr.bf16.mxu0 %v4340_v43  ;;  %3384 = vmatprep.mubr.bf16.mxu1 %v1924_v59  ;;  %v1362_v42 = vadd.f32 %v1361_v35, %v1360_v26  ;;  %v4383_v43 = vld [vmem:[%s5104_s27 + $0x390] ss:$8 sps:$4 sm:$0xff]   ;;  %v1458_v45 = vadd.f32 %v1457_v37, %v1456_v29  ;;  %v1410_v46 = vadd.f32 %v1409_v38, %v1408_v30  ;;  %v3571_v37 = vld [vmem:[%s1288_s29] sm:$0x3] }
 0x163   : > { %3548 = vmatprep.mubr.bf16.mxu0 %v1932_v63  ;;  %v1506_v47 = vadd.f32 %v1505_v39, %v1504_v31  ;;  %v4395_v59 = vld [vmem:[%s5104_s27 + $0x3b0] ss:$8 sps:$4 sm:$0xff]  }
 0x164   : > { %3355 = vmatpush1.bf16.msra.mxu1 %v4335_v50  ;;  %v4389_v50 = vld [vmem:[%s5104_s27 + $0x3a0] ss:$8 sps:$4 sm:$0xff]   ;;  %v1459_v53 = vrot.slane %v1458_v45, 1  ;;  %v4419_v26 = vld [vmem:[%s5104_s27 + $0x3f0] ss:$8 sps:$4 sm:$0xff]  }
 0x165   : > { %3519 = vmatpush1.bf16.msra.mxu0 %v4338_v51  ;;  %3356 = vmatprep.subr.bf16.mxu1 %v4343_v54  ;;  %v1363_v51 = vrot.slane %v1362_v42, 1  ;;  %v1411_v54 = vrot.slane %v1410_v46, 1 }
 0x166   : > { %3520 = vmatprep.subr.bf16.mxu0 %v4346_v55  ;;  %v1507_v55 = vrot.slane %v1506_v47, 1 }
 0x167   : > { %v1364_v58 = vadd.f32 %v1363_v51, %v1362_v42 }
 0x168   : > { %3357 = vmatpush1.bf16.msra.mxu1 %v4341_v61  ;;  %v1460_v61 = vadd.f32 %v1459_v53, %v1458_v45  ;;  %v1508_v63 = vadd.f32 %v1507_v55, %v1506_v47 }
 0x169   : > { %3521 = vmatpush1.bf16.msra.mxu0 %v4344_v62  ;;  %3358 = vmatprep.subr.bf16.mxu1 %v4349_v0  ;;  %v1412_v62 = vadd.f32 %v1411_v54, %v1410_v46  ;;  %v4403_v0 = vld [vmem:[%s5104_s27 + $0x3c4] ss:$8 sps:$4 sm:$0xff]  }
 0x16a   : > { %3522 = vmatprep.subr.bf16.mxu0 %v4352_v1  ;;  %v4406_v1 = vld [vmem:[%s5104_s27 + $0x7c4] ss:$8 sps:$4 sm:$0xff]  }
 0x16c   : > { %3359 = vmatpush1.bf16.msra.mxu1 %v4347_v2  ;;  %v4401_v2 = vld [vmem:[%s5104_s27 + $0x3c0] ss:$8 sps:$4 sm:$0xff]  }
 0x16d   : > { %3523 = vmatpush1.bf16.msra.mxu0 %v4350_v3  ;;  %3360 = vmatprep.subr.bf16.mxu1 %v4355_v4  ;;  %v1522_v3 = vmul.f32 0.125, %v1364_v58  ;;  %v4404_v4 = vld [vmem:[%s5104_s27 + $0x7c0] ss:$8 sps:$4 sm:$0xff]  }
 0x16e   : > { %3524 = vmatprep.subr.bf16.mxu0 %v4358_v5  ;;  %v1538_v5 = vmul.f32 0.125, %v1460_v61 }
 0x170   : > { %3361 = vmatpush1.bf16.msra.mxu1 %v4353_v6  ;;  %v1530_v6 = vmul.f32 0.125, %v1412_v62 }
 0x171   : > { %3525 = vmatpush1.bf16.msra.mxu0 %v4356_v7  ;;  %3362 = vmatprep.subr.bf16.mxu1 %v4361_v8  ;;  %v1546_v7 = vmul.f32 0.125, %v1508_v63  ;;  %v4409_v8 = vld [vmem:[%s5104_s27 + $0x3d4] ss:$8 sps:$4 sm:$0xff]  }
 0x172   : > { %3526 = vmatprep.subr.bf16.mxu0 %v4364_v9  ;;  %v4412_v9 = vld [vmem:[%s5104_s27 + $0x7d4] ss:$8 sps:$4 sm:$0xff]   ;;  %v1562_v14 = vpack.c.bf16 %v1530_v6, %v1530_v6 }
 0x173   : > { %v1578_v15 = vpack.c.bf16 %v1546_v7, %v1546_v7 }
 0x174   : > { %3363 = vmatpush1.bf16.msra.mxu1 %v4359_v10  ;;  %v1554_v10 = vpack.c.bf16 %v1522_v3, %v1522_v3  ;;  %v1882_v22 = vunpack.c.l.b16 %v1562_v14 }
 0x175   : > { %3527 = vmatpush1.bf16.msra.mxu0 %v4362_v11  ;;  %3364 = vmatprep.subr.bf16.mxu1 %v4367_v12  ;;  %v4407_v11 = vld [vmem:[%s5104_s27 + $0x3d0] ss:$8 sps:$4 sm:$0xff]   ;;  %v1898_v23 = vunpack.c.l.b16 %v1578_v15 }
 0x176   : > { %3528 = vmatprep.subr.bf16.mxu0 %v4370_v13  ;;  %v4410_v12 = vld [vmem:[%s5104_s27 + $0x7d0] ss:$8 sps:$4 sm:$0xff]   ;;  %v1570_v13 = vpack.c.bf16 %v1538_v5, %v1538_v5 }
 0x177   : > { %v1915_v29 = vsel %vm1900_vm0, %v1898_v23, %v1882_v22 }
 0x178   : > { %3365 = vmatpush1.bf16.msra.mxu1 %v4365_v18  ;;  %v4413_v18 = vld [vmem:[%s5104_s27 + $0x3e0] ss:$8 sps:$4 sm:$0xff]   ;;  %v1890_v21 = vunpack.c.l.b16 %v1570_v13  ;;  %v1931_v31 = vpack.c.b16 %v1915_v29, %v1915_v29 }
 0x179   : > { %3529 = vmatpush1.bf16.msra.mxu0 %v4368_v20  ;;  %3366 = vmatprep.subr.bf16.mxu1 %v4373_v24  ;;  %v1874_v20 = vunpack.c.l.b16 %v1554_v10  ;;  %v4421_v24 = vld [vmem:[%s5104_s27 + $0x3f4] ss:$8 sps:$4 sm:$0xff]  }
 0x17a   : > { %3530 = vmatprep.subr.bf16.mxu0 %v4376_v25  ;;  %v4424_v25 = vld [vmem:[%s5104_s27 + $0x7f4] ss:$8 sps:$4 sm:$0xff]  }
 0x17c   : > { %3367 = vmatpush1.bf16.msra.mxu1 %v4371_v27  ;;  %v4422_v27 = vld [vmem:[%s5104_s27 + $0x7f0] ss:$8 sps:$4 sm:$0xff]   ;;  %s1283_s27 = scalar_lea.vmem %s5520_s2, %s5530_s14  ;;  %s4429_s14 = sshll.u32 %s4489_s19, 4  ;;  %s4430_s14 = int_to_ptr.vmem [resolvable:$false] %s4429_s14 }
 0x17d   : > { %3531 = vmatpush1.bf16.msra.mxu0 %v4374_v28  ;;  %3368 = vmatprep.subr.bf16.mxu1 %v4379_v32  ;;  %v1907_v28 = vsel %vm1900_vm0, %v1890_v21, %v1874_v20  ;;  %v3559_v32 = vlaneseq  ;;  %v3557_v35 = vld [vmem:[%s1283_s27] sm:$0x3]  ;;  %s4431_s20 = scalar_lea.vmem %s4430_s14, 128  ;;  %p4432_p3 = scmp.lt.s32.totalorder %s5476_s7, %s4430_s14 }
 0x17e   : > { %3532 = vmatprep.subr.bf16.mxu0 %v4382_v33  ;;  %v1923_v30 = vpack.c.b16 %v1907_v28, %v1907_v28  ;;  %p4433_p4 = scmp.lt.s32.totalorder %s4431_s20, %s4425_s13 }
 0x17f   : > { %v3560_v33 = vshrl.u32 %v3559_v32, 7 }
 0x180   : > { %3369 = vmatpush1.bf16.msra.mxu1 %v4377_v34  ;;  %p4434_p5 = por %p4433_p4, %p4432_p3 }
 0x181   : > { %3533 = vmatpush1.bf16.msra.mxu0 %v4380_v36  ;;  %3370 = vmatprep.subr.bf16.mxu1 %v4385_v40  ;;  %v3561_v34 = vsub.s32 0, %v3560_v33  ;;  %v3565_v36 = vsub.s32 1, %v3560_v33 }
 0x182   : > { %3534 = vmatprep.subr.bf16.mxu0 %v4388_v41  ;;  %p4435_p7 = pnand %p4434_p5, %p4428_p2 }
 0x183   : > { %v3562_v38 = vrot.slane %v3557_v35, %v3561_v34  ;;  %v3566_v41 = vrot.slane %v3557_v35, %v3565_v36  ;;  %v3580_v47 = vrot.slane %v3571_v37, %v3565_v36 }
 0x184   : > { %3371 = vmatpush1.bf16.msra.mxu1 %v4383_v43  ;;  %v3576_v43 = vrot.slane %v3571_v37, %v3561_v34 }
 0x185   : > { %3535 = vmatpush1.bf16.msra.mxu0 %v4386_v44  ;;  %3372 = vmatprep.subr.bf16.mxu1 %v4391_v48 }
 0x186   : > { %3536 = vmatprep.subr.bf16.mxu0 %v4394_v49 }
 0x188   : > { %3373 = vmatpush1.bf16.msra.mxu1 %v4389_v50 }
 0x189   : > { %3537 = vmatpush1.bf16.msra.mxu0 %v4392_v52  ;;  %3374 = vmatprep.subr.bf16.mxu1 %v4397_v56 }
 0x18a   : > { %3538 = vmatprep.subr.bf16.mxu0 %v4400_v57 }
 0x18c   : > { %3375 = vmatpush1.bf16.msra.mxu1 %v4395_v59 }
 0x18d   : > { %3539 = vmatpush1.bf16.msra.mxu0 %v4398_v60  ;;  %3376 = vmatprep.subr.bf16.mxu1 %v4403_v0 }
 0x18e   : > { %3540 = vmatprep.subr.bf16.mxu0 %v4406_v1 }
 0x190   : > { %3377 = vmatpush1.bf16.msra.mxu1 %v4401_v2 }
 0x191   : > { %3541 = vmatpush1.bf16.msra.mxu0 %v4404_v4  ;;  %3378 = vmatprep.subr.bf16.mxu1 %v4409_v8 }
 0x192   : > { %3542 = vmatprep.subr.bf16.mxu0 %v4412_v9 }
 0x194   : > { %3379 = vmatpush1.bf16.msra.mxu1 %v4407_v11 }
 0x195   : > { %3543 = vmatpush1.bf16.msra.mxu0 %v4410_v12  ;;  %3380 = vmatprep.subr.bf16.mxu1 %v4415_v16 }
 0x196   : > { %3544 = vmatprep.subr.bf16.mxu0 %v4418_v17 }
 0x198   : > { %3381 = vmatpush1.bf16.msra.mxu1 %v4413_v18 }
 0x199   : > { %3545 = vmatpush1.bf16.msra.mxu0 %v4416_v19  ;;  %3382 = vmatprep.subr.bf16.mxu1 %v4421_v24 }
 0x19a   : > { %3546 = vmatprep.subr.bf16.mxu0 %v4424_v25 }
 0x19c   : > { %3383 = vmatpush1.bf16.msra.mxu1 %v4419_v26 }
 0x19d   : > { %3547 = vmatpush1.bf16.msra.mxu0 %v4422_v27 }
 0x19f   : > { %3385 = vmatmul.mubr.bf16.vlgmr.msra.gmra.mrb[0].mxu1 %v1923_v30 }
 0x1a0   : > { %3549 = vmatmul.mubr.bf16.vlgmr.msra.gmra.mrb[0].mxu0 %v1931_v31 }
 0x272   : > { %v3386_v39 = vpop.f32.mrb[0].mxu1 }
 0x273   : > { %v3550_v40 = vpop.f32.mrb[0].mxu0  ;;  %v3388_v44 = vpop.f32.mrb[1].mxu1 }
 0x274   : > { %v3976_v42 = vadd.f32 %v3550_v40, %v3386_v39  ;;  %v3552_v45 = vpop.f32.mrb[1].mxu0  ;;  %v3390_v48 = vpop.f32.mrb[2].mxu1 }
 0x275   : > { %v3977_v46 = vadd.f32 %v3552_v45, %v3388_v44  ;;  %v3554_v49 = vpop.f32.mrb[2].mxu0  ;;  %v3391_v51 = vpop.f32.mrb[3].mxu1 }
 0x276   : > { %v3569_v50 = vmul.f32 %v3976_v42, %v3562_v38  ;;  %v3555_v52 = vpop.f32.mrb[3].mxu0 }
 0x277   : > { %v3570_v53 = vmul.f32 %v3977_v46, %v3566_v41 }
 0x278   : > { %v3583_v54 = vadd.f32 %v3576_v43, %v3569_v50 }
 0x279   : > { %v3584_v55 = vadd.f32 %v3580_v47, %v3570_v53 }
 0x27a   : > { %v3587_v56 = vmul.f32 0.1, %v3583_v54  ;;  %vm3585_vm1 = vcmp.ge.f32.partialorder %v3583_v54, 0.0 }
 0x27b   : > { %v3588_v57 = vmul.f32 0.1, %v3584_v55  ;;  %vm3586_vm2 = vcmp.ge.f32.partialorder %v3584_v55, 0.0 }
 0x27c   : > { %v3589_v58 = vsel %vm3585_vm1, %v3583_v54, %v3587_v56 }
 0x27d   : > { %v3590_v59 = vsel %vm3586_vm2, %v3584_v55, %v3588_v57 }
 0x27e   : > { %v3593_v60 = vcombine.low %v3589_v58, %v3590_v59 }
 0x280   : > { %3968 = vst.sshfl [vmem:[%s1278_s6] sm:$0x33 pattern:$0x76325410] %v3593_v60 }
 0x281   : > { %4438 = shalt.err (!%p4435_p7)
}
 0x282   : > { %s4439_s8 = scalar_lea.hbm %s5474_s11, 64  ;;  %s4443_s23 = scalar_lea.hbm %s5522_s4, 128 }
 0x283   : > { %p4440_p10 = scmp.ne.s32.totalorder %s5474_s11, %s4439_s8  ;;  %p4444_p13 = scmp.lt.u32.totalorder %s5474_s11, %s5522_s4 }
 0x284   : > { %p4445_p0 = scmp.lt.u32.totalorder %s4443_s23, %s4439_s8  ;;  %p4447_p2 = scmp.lt.u32.totalorder %s4439_s8, %s5474_s11 }
 0x285   : > { %p4441_p11 = pnand %p4440_p10, %p4554_p6 }
 0x286   : > { %p4446_p1 = por %p4445_p0, %p4444_p13 }
 0x287   : > { %p4442_p12 = pneg %p4441_p11 }
 0x288   : > { %p4448_p3 = por %p4447_p2, %p4446_p1 }
 0x28a   : > { %p4449_p4 = pnand %p4448_p3, %p4442_p12 }
 0x28c   : > { %4452 = shalt.err (!%p4449_p4)
}
 0x28d   : > { %4002 = dma.vmem_to_hbm [thread:$0]  (%p4554_p6), %s5476_s7, 64, %s5474_s11, %s3604_s12  }
 0x28e PF: > { %s3630_s30 = sand.u32 1, %s4475_s15   ;;  %p4005_p5 = pnand %p3703_p9, %p4558_p8 }
 0x28f   : > { %s3631_s5 = scalar_lea.sflag [#allocation4], %s3630_s30 }
 0x290   : > { %4470 = dma.done.wait (!%p4005_p5), %s3631_s5, 64  }
 0x291   : > { %4472 = vsyncadd (!%p4005_p5), %s3631_s5, 4294967232  ;;  %p14_p7 = scmp.ge.s32.totalorder %s4540_s21, 4   ;;  %s5525_s15 = smov %s4479_s16 }
 0x292   : > { %s5526_s16 = smov %s4483_s17  ;;  %s5527_s17 = smov %s4552_s24 }
 0x293   : > { %s5528_s18 = smov %s4540_s21  ;;  %16 = sbr.rel (!%p14_p7) target bundleno = 3 (0x3), region = 120 }
 0x29a   :  { %3636 = vsyncpa [#allocation4], 1 }
 0x29b   :  { %3638 = vsyncpa [#allocation4 + $0x1], 1 }

</bundles_post_ra>
